<compile_context>
chip_gen: v7x
topology: tpu7x:2x2x1
jax: 0.10.0
libtpu: 0.0.40
codegen_flags: <defaults>
</compile_context>

<pallas_src>
import jax
import jax.numpy as jnp
from jax.experimental import pallas as pl
from jax.experimental.pallas import tpu as pltpu

# -------------------- small, module-consistent config --------------------
NUM_LAYERS        = 2
ATOM_FEATURE_SIZE = 1            # mass -> 1 scalar channel, velocity -> 1 vector channel
NUM_CHANNELS      = 4
NUM_DEGREES       = 4
N_GRAPHS          = 2
NODES_PER_GRAPH   = 8
N_NODES           = N_GRAPHS * NODES_PER_GRAPH

CMID    = NUM_DEGREES * NUM_CHANNELS   # fiber 'out' multiplicity (16)
HIDDEN  = 64                           # FCblock[0] width
OUT_DIM = 2                            # FCblock[1] width


# -------------------- fused forward kernel (single grid step) --------------------
def _fused_forward_kernel(mass_ref, vel_ref, res_w_ref, nw_ref, nvec_ref,
                          tail_ref, out_ref):
    n, N = NODES_PER_GRAPH, N_NODES

    def mac(x, w):
        # [rows, K] @ [K, Cout] as K unrolled VPU broadcast-MACs.  K = 4 here:
        # a 4-deep MXU contraction pays full systolic fill/drain (plus a
        # sequential MRF pop on v5e/v6e) for ~no useful work, while the 4 FMAs
        # sit in otherwise-idle VALU slots.
        acc = x[:, 0:1] * w[0:1, :]
        for k in range(1, w.shape[0]):
            acc = acc + x[:, k:k + 1] * w[k:k + 1, :]
        return acc

    def gnorm(h0, h1, layer):
        # GNormSE3: per-degree norm -> LayerNorm(C) -> ReLU -> Linear -> rescale.
        nv0 = nvec_ref[layer, 0]          # [3, C] = gamma / beta / linear bias
        nv1 = nvec_ref[layer, 1]
        # ---- degree 0 ----
        sq0 = h0 * h0
        inv0 = jax.lax.rsqrt(sq0 + 1e-24)                  # EUP
        nrm0, ph0 = sq0 * inv0, h0 * inv0                  # |x|, x/|x|
        mu = jnp.mean(nrm0, axis=-1, keepdims=True)
        var = jnp.mean((nrm0 - mu) ** 2, axis=-1, keepdims=True)
        ln0 = (nrm0 - mu) * jax.lax.rsqrt(var + 1e-5) * nv0[0:1, :] + nv0[1:2, :]
        t0 = mac(jnp.maximum(ln0, 0.0), nw_ref[layer, 0]) + nv0[2:3, :]
        h0 = t0 * ph0
        # ---- degree 1: one [3N, C] slab, component-major ----
        x, y, z = h1[0:N], h1[N:2 * N], h1[2 * N:3 * N]
        sq1 = x * x + y * y + z * z                         # [N, C]
        inv1 = jax.lax.rsqrt(sq1 + 1e-24)
        nrm1 = sq1 * inv1
        mu = jnp.mean(nrm1, axis=-1, keepdims=True)
        var = jnp.mean((nrm1 - mu) ** 2, axis=-1, keepdims=True)
        ln1 = (nrm1 - mu) * jax.lax.rsqrt(var + 1e-5) * nv1[0:1, :] + nv1[1:2, :]
        t1 = mac(jnp.maximum(ln1, 0.0), nw_ref[layer, 1]) + nv1[2:3, :]
        scale = t1 * inv1                                   # transform / |x| per node
        h1 = h1 * jnp.concatenate([scale, scale, scale], axis=0)
        return h0, h1

    # ---- layer 0 GSE3Res 1x1 projection: Cin = 1 (mass / velocity), so it is
    #      a rank-1 broadcast multiply on the raw inputs — no channel padding.
    mass = mass_ref[...]                                    # [N, 1]
    vel = vel_ref[...]                                      # [N, 3]
    h0 = mass * res_w_ref[0, 0][0:1, :]                     # [N, C]
    w1 = res_w_ref[0, 1][0:1, :]                            # [1, C]
    h1 = jnp.concatenate([vel[:, m:m + 1] * w1 for m in range(3)], axis=0)  # [3N, C]
    h0, h1 = gnorm(h0, h1, 0)

    # ---- remaining layers: full C -> C 1x1 projection + GNorm ----
    for layer in range(1, NUM_LAYERS):
        h0 = mac(h0, res_w_ref[layer, 0])
        h1 = mac(h1, res_w_ref[layer, 1])
        h0, h1 = gnorm(h0, h1, layer)

    # TODO(synk): mid-fiber degrees 2 and 3 are exactly zero here (their only
    # source is the omitted attention / pairwise-conv message paths), so their
    # GNorm work is skipped instead of being computed on zeros.

    # ---- per-graph average pooling FIRST (mean commutes with the linear
    #      tail), then the pre-folded si @ fc1 @ fc2 tail as one [C, OUT_DIM]
    #      broadcast-MAC per degree.
    def graph_mean(x):                                      # [q*n, C] -> [q, C]
        return jnp.concatenate(
            [jnp.mean(x[g * n:(g + 1) * n], axis=0, keepdims=True)
             for g in range(x.shape[0] // n)], axis=0)

    p0 = graph_mean(h0)                                     # [G, C]
    p1 = graph_mean(h1)                                     # [3G, C]  (m-major, graph inner)
    out0 = mac(p0, tail_ref[0])                             # [G, OUT_DIM]
    out1 = mac(p1, tail_ref[1])                             # [3G, OUT_DIM]
    out_ref[...] = jnp.concatenate([out0, out1], axis=0)    # single [4G, OUT_DIM] store


def _fused_pallas_call():
    C, N, L, G = NUM_CHANNELS, N_NODES, NUM_LAYERS, N_GRAPHS
    return pl.pallas_call(
        _fused_forward_kernel,
        out_shape=jax.ShapeDtypeStruct((4 * G, OUT_DIM), jnp.float32),
        # Single grid step: the whole problem fits in a few vregs, so a
        # per-graph grid only adds launch / DMA-descriptor overhead on every
        # generation (including v7x at n = 8 nodes per graph).
        grid=(1,),
        in_specs=[
            pl.BlockSpec((N, 1), lambda i: (0, 0)),              # raw mass
            pl.BlockSpec((N, 3), lambda i: (0, 0)),              # raw velocity
            pl.BlockSpec((L, 2, C, C), lambda i: (0, 0, 0, 0)),  # GSE3Res 1x1 weights
            pl.BlockSpec((L, 2, C, C), lambda i: (0, 0, 0, 0)),  # GNorm linear weights
            pl.BlockSpec((L, 2, 3, C), lambda i: (0, 0, 0, 0)),  # gamma/beta/bias packed
            pl.BlockSpec((2, C, OUT_DIM), lambda i: (0, 0, 0)),  # folded si@fc1@fc2 tail
        ],
        out_specs=pl.BlockSpec((4 * G, OUT_DIM), lambda i: (0, 0)),
        compiler_params=pltpu.CompilerParams(
            dimension_semantics=("arbitrary",),
            vmem_limit_bytes=4 * 1024 * 1024),       # working set is a few KB
    )


@jax.jit
def se3_transformer_vector_forward(params, mass, velocity):
    """h = {'0': logmass.unsqueeze(-1), '1': velocity.unsqueeze(1)} -> fused forward."""
    out = _fused_pallas_call()(mass, velocity, params["res_w"], params["nw"],
                               params["norm_vecs"], params["tail"])
    G = N_GRAPHS
    out0 = out[:G, :, None]                                           # [G, 2, 1]
    out1 = jnp.transpose(out[G:].reshape(3, G, OUT_DIM), (1, 2, 0))   # [G, 2, 3]
    return {0: out0, 1: out1}


# -------------------- deterministic parameter construction --------------------
def _randw(key, cin, cout):
    return jax.random.normal(key, (cin, cout), jnp.float32) / jnp.sqrt(float(cin))


def init_params(key):
    C = NUM_CHANNELS
    # GSE3Res 1x1 skip / projection weights, [Cin_pad, Cout] layout; layer 0 has
    # Cin = 1 (mass / velocity channel) and is zero-row-padded to C.
    res, cin = [], ATOM_FEATURE_SIZE
    for _ in range(NUM_LAYERS):
        per_deg = []
        for _d in (0, 1):
            key, k = jax.random.split(key)
            per_deg.append(jnp.pad(_randw(k, cin, C), ((0, C - cin), (0, 0))))
        res.append(jnp.stack(per_deg))
        cin = C
    res_w = jnp.stack(res)                                     # [L, 2, C, C]

    nw = []
    for _ in range(NUM_LAYERS):
        per_deg = []
        for _d in (0, 1):
            key, k = jax.random.split(key)
            per_deg.append(_randw(k, C, C))
        nw.append(jnp.stack(per_deg))
    nw = jnp.stack(nw)                                         # [L, 2, C, C]

    key, kg, kb, knb = jax.random.split(key, 4)
    gamma = 1.0 + 0.1 * jax.random.normal(kg, (NUM_LAYERS, 2, C), jnp.float32)
    beta = 0.1 * jax.random.normal(kb, (NUM_LAYERS, 2, C), jnp.float32)
    nbias = 0.1 * jax.random.normal(knb, (NUM_LAYERS, 2, C), jnp.float32)
    norm_vecs = jnp.stack([gamma, beta, nbias], axis=2)        # [L, 2, 3, C]

    si, fc1, fc2 = [], [], []
    for _d in (0, 1):
        key, k1, k2, k3 = jax.random.split(key, 4)
        si.append(_randw(k1, C, CMID))                         # GConvSE3 self-interaction
        fc1.append(_randw(k2, CMID, HIDDEN))                   # FCblock[0]
        fc2.append(_randw(k3, HIDDEN, OUT_DIM))                # FCblock[1]
    si, fc1, fc2 = jnp.stack(si), jnp.stack(fc1), jnp.stack(fc2)

    # Pre-fold the purely linear tail (self-interaction -> FCblock[0] ->
    # FCblock[1]) into one [C, OUT_DIM] matrix per degree; average pooling
    # commutes with linear maps, so the kernel pools first and applies this.
    tail = jnp.einsum("dca,dab,dbo->dco", si, fc1, fc2)        # [2, C, OUT_DIM]

    return {"res_w": res_w, "nw": nw, "norm_vecs": norm_vecs, "tail": tail,
            "si": si, "fc1": fc1, "fc2": fc2}


# -------------------- pure-JAX reference (correctness check only) --------------------
def _reference_forward(params, mass, velocity):
    """Module op order with unfolded si/fc1/fc2 chain and pooling after FC[0]."""
    C = NUM_CHANNELS
    h0 = jnp.pad(mass, ((0, 0), (0, C - mass.shape[1])))                   # [N, C]
    h1 = jnp.pad(velocity[:, :, None], ((0, 0), (0, 0), (0, C - 1)))       # [N, 3, C]
    for layer in range(NUM_LAYERS):
        h0 = h0 @ params["res_w"][layer, 0]
        h1 = jnp.einsum("nmc,co->nmo", h1, params["res_w"][layer, 1])
        g0, b0, nb0 = params["norm_vecs"][layer, 0]
        g1, b1, nb1 = params["norm_vecs"][layer, 1]
        n0 = jnp.sqrt(h0 * h0 + 1e-24); p0 = h0 / n0
        mu = n0.mean(-1, keepdims=True); var = ((n0 - mu) ** 2).mean(-1, keepdims=True)
        ln = (n0 - mu) / jnp.sqrt(var + 1e-5) * g0 + b0
        h0 = (jnp.maximum(ln, 0.0) @ params["nw"][layer, 0] + nb0) * p0
        n1 = jnp.sqrt((h1 * h1).sum(1) + 1e-24); p1 = h1 / n1[:, None, :]
        mu = n1.mean(-1, keepdims=True); var = ((n1 - mu) ** 2).mean(-1, keepdims=True)
        ln = (n1 - mu) / jnp.sqrt(var + 1e-5) * g1 + b1
        h1 = (jnp.maximum(ln, 0.0) @ params["nw"][layer, 1] + nb1)[:, None, :] * p1
    h0 = h0 @ params["si"][0] @ params["fc1"][0]
    h1 = jnp.einsum("nmc,co,od->nmd", h1, params["si"][1], params["fc1"][1])
    h0 = h0.reshape(N_GRAPHS, NODES_PER_GRAPH, HIDDEN).mean(1)
    h1 = h1.reshape(N_GRAPHS, NODES_PER_GRAPH, 3, HIDDEN).mean(1)
    return {0: (h0 @ params["fc2"][0])[:, :, None],
            1: jnp.einsum("gmc,cd->gdm", h1, params["fc2"][1])}


if __name__ == "__main__":
    key = jax.random.PRNGKey(0)
    key, k_mass, k_vel, k_params = jax.random.split(key, 4)

    mass = jax.random.normal(k_mass, (N_NODES, 1), jnp.float32)        # G.ndata['mass']
    velocity = jax.random.normal(k_vel, (N_NODES, 3), jnp.float32)     # G.ndata['velocity']
    params = init_params(k_params)

    out = se3_transformer_vector_forward(params, mass, velocity)
    jax.block_until_ready(out)

    ref = _reference_forward(params, mass, velocity)
    assert out[0].shape == (N_GRAPHS, 2, 1)    # degree-0 output (scalars)
    assert out[1].shape == (N_GRAPHS, 2, 3)    # degree-1 output (vectors)
    assert jnp.all(jnp.isfinite(out[0])) and jnp.all(jnp.isfinite(out[1]))
    assert jnp.allclose(out[0], ref[0], rtol=1e-3, atol=1e-3)
    assert jnp.allclose(out[1], ref[1], rtol=1e-3, atol=1e-3)
    print("KERNEL_OK")
</pallas_src>

<mosaic_0001>
module attributes {stable_mosaic.version = 11 : i64} {
  func.func @_fused_forward_kernel(%arg0: i32, %arg1: memref<16x1xf32, #tpu.memory_space<vmem>>, %arg2: memref<16x3xf32, #tpu.memory_space<vmem>>, %arg3: memref<2x2x4x4xf32, #tpu.memory_space<vmem>>, %arg4: memref<2x2x4x4xf32, #tpu.memory_space<vmem>>, %arg5: memref<2x2x3x4xf32, #tpu.memory_space<vmem>>, %arg6: memref<2x4x2xf32, #tpu.memory_space<vmem>>, %arg7: memref<8x2xf32, #tpu.memory_space<vmem>>) attributes {dimension_semantics = [#tpu.dimension_semantics<arbitrary>], iteration_bounds = array<i64: 1>, scalar_prefetch = 0 : i64, scratch_operands = 0 : i64, tpu.core_type = #tpu.core_type<tc>, window_params = [{pipeline_mode = #tpu.pipeline_mode<synchronous>, transform_indices = @transform_0, window_bounds = array<i64: 16, 1>}, {pipeline_mode = #tpu.pipeline_mode<synchronous>, transform_indices = @transform_1, window_bounds = array<i64: 16, 3>}, {pipeline_mode = #tpu.pipeline_mode<synchronous>, transform_indices = @transform_2, window_bounds = array<i64: 2, 2, 4, 4>}, {pipeline_mode = #tpu.pipeline_mode<synchronous>, transform_indices = @transform_3, window_bounds = array<i64: 2, 2, 4, 4>}, {pipeline_mode = #tpu.pipeline_mode<synchronous>, transform_indices = @transform_4, window_bounds = array<i64: 2, 2, 3, 4>}, {pipeline_mode = #tpu.pipeline_mode<synchronous>, transform_indices = @transform_5, window_bounds = array<i64: 2, 4, 2>}, {pipeline_mode = #tpu.pipeline_mode<synchronous>, transform_indices = @transform_6, window_bounds = array<i64: 8, 2>}]} {
    %c0 = arith.constant 0 : index
    %c0_0 = arith.constant 0 : index
    %0 = vector.load %arg1[%c0, %c0_0] : memref<16x1xf32, #tpu.memory_space<vmem>>, vector<16x1xf32>
    %c0_1 = arith.constant 0 : index
    %c0_2 = arith.constant 0 : index
    %1 = vector.load %arg2[%c0_1, %c0_2] : memref<16x3xf32, #tpu.memory_space<vmem>>, vector<16x3xf32>
    %c0_3 = arith.constant 0 : index
    %c0_4 = arith.constant 0 : index
    %c0_5 = arith.constant 0 : index
    %c0_6 = arith.constant 0 : index
    %2 = vector.load %arg3[%c0_3, %c0_4, %c0_5, %c0_6] : memref<2x2x4x4xf32, #tpu.memory_space<vmem>>, vector<1x1x4x4xf32>
    %3 = vector.shape_cast %2 : vector<1x1x4x4xf32> to vector<4x4xf32>
    %4 = vector.extract_strided_slice %3 {offsets = [0, 0], sizes = [1, 4], strides = [1, 1]} : vector<4x4xf32> to vector<1x4xf32>
    %5 = vector.broadcast %0 : vector<16x1xf32> to vector<16x4xf32>
    %6 = vector.broadcast %4 : vector<1x4xf32> to vector<16x4xf32>
    %7 = arith.mulf %5, %6 : vector<16x4xf32>
    %c0_7 = arith.constant 0 : index
    %c1 = arith.constant 1 : index
    %c0_8 = arith.constant 0 : index
    %c0_9 = arith.constant 0 : index
    %8 = vector.load %arg3[%c0_7, %c1, %c0_8, %c0_9] : memref<2x2x4x4xf32, #tpu.memory_space<vmem>>, vector<1x1x4x4xf32>
    %9 = vector.shape_cast %8 : vector<1x1x4x4xf32> to vector<4x4xf32>
    %10 = vector.extract_strided_slice %9 {offsets = [0, 0], sizes = [1, 4], strides = [1, 1]} : vector<4x4xf32> to vector<1x4xf32>
    %11 = vector.extract_strided_slice %1 {offsets = [0, 0], sizes = [16, 1], strides = [1, 1]} : vector<16x3xf32> to vector<16x1xf32>
    %12 = vector.broadcast %11 : vector<16x1xf32> to vector<16x4xf32>
    %13 = vector.broadcast %10 : vector<1x4xf32> to vector<16x4xf32>
    %14 = arith.mulf %12, %13 : vector<16x4xf32>
    %15 = vector.extract_strided_slice %1 {offsets = [0, 1], sizes = [16, 1], strides = [1, 1]} : vector<16x3xf32> to vector<16x1xf32>
    %16 = vector.broadcast %15 : vector<16x1xf32> to vector<16x4xf32>
    %17 = vector.broadcast %10 : vector<1x4xf32> to vector<16x4xf32>
    %18 = arith.mulf %16, %17 : vector<16x4xf32>
    %19 = vector.extract_strided_slice %1 {offsets = [0, 2], sizes = [16, 1], strides = [1, 1]} : vector<16x3xf32> to vector<16x1xf32>
    %20 = vector.broadcast %19 : vector<16x1xf32> to vector<16x4xf32>
    %21 = vector.broadcast %10 : vector<1x4xf32> to vector<16x4xf32>
    %22 = arith.mulf %20, %21 : vector<16x4xf32>
    %23 = tpu.concatenate %14, %18, %22 in 0 : vector<16x4xf32>, vector<16x4xf32>, vector<16x4xf32> -> vector<48x4xf32>
    %c0_10 = arith.constant 0 : index
    %c0_11 = arith.constant 0 : index
    %c0_12 = arith.constant 0 : index
    %c0_13 = arith.constant 0 : index
    %24 = vector.load %arg5[%c0_10, %c0_11, %c0_12, %c0_13] : memref<2x2x3x4xf32, #tpu.memory_space<vmem>>, vector<1x1x3x4xf32>
    %25 = vector.shape_cast %24 : vector<1x1x3x4xf32> to vector<3x4xf32>
    %c0_14 = arith.constant 0 : index
    %c1_15 = arith.constant 1 : index
    %c0_16 = arith.constant 0 : index
    %c0_17 = arith.constant 0 : index
    %26 = vector.load %arg5[%c0_14, %c1_15, %c0_16, %c0_17] : memref<2x2x3x4xf32, #tpu.memory_space<vmem>>, vector<1x1x3x4xf32>
    %27 = vector.shape_cast %26 : vector<1x1x3x4xf32> to vector<3x4xf32>
    %28 = arith.mulf %7, %7 : vector<16x4xf32>
    %cst = arith.constant 1.000000e-24 : f32
    %29 = vector.broadcast %cst : f32 to vector<16x4xf32>
    %30 = arith.addf %28, %29 : vector<16x4xf32>
    %31 = math.rsqrt %30 : vector<16x4xf32>
    %32 = arith.mulf %28, %31 : vector<16x4xf32>
    %33 = arith.mulf %7, %31 : vector<16x4xf32>
    %cst_18 = arith.constant dense<0.000000e+00> : vector<16xf32>
    %34 = vector.multi_reduction <add>, %32, %cst_18 [1] : vector<16x4xf32> to vector<16xf32>
    %35 = vector.shape_cast %34 : vector<16xf32> to vector<16x1xf32>
    %cst_19 = arith.constant 4.000000e+00 : f32
    %36 = vector.broadcast %cst_19 : f32 to vector<16x1xf32>
    %37 = arith.divf %35, %36 : vector<16x1xf32>
    %38 = vector.broadcast %37 : vector<16x1xf32> to vector<16x4xf32>
    %39 = arith.subf %32, %38 : vector<16x4xf32>
    %40 = arith.mulf %39, %39 : vector<16x4xf32>
    %cst_20 = arith.constant dense<0.000000e+00> : vector<16xf32>
    %41 = vector.multi_reduction <add>, %40, %cst_20 [1] : vector<16x4xf32> to vector<16xf32>
    %42 = vector.shape_cast %41 : vector<16xf32> to vector<16x1xf32>
    %cst_21 = arith.constant 4.000000e+00 : f32
    %43 = vector.broadcast %cst_21 : f32 to vector<16x1xf32>
    %44 = arith.divf %42, %43 : vector<16x1xf32>
    %45 = vector.broadcast %37 : vector<16x1xf32> to vector<16x4xf32>
    %46 = arith.subf %32, %45 : vector<16x4xf32>
    %cst_22 = arith.constant 9.99999974E-6 : f32
    %47 = vector.broadcast %cst_22 : f32 to vector<16x1xf32>
    %48 = arith.addf %44, %47 : vector<16x1xf32>
    %49 = math.rsqrt %48 : vector<16x1xf32>
    %50 = vector.broadcast %49 : vector<16x1xf32> to vector<16x4xf32>
    %51 = arith.mulf %46, %50 : vector<16x4xf32>
    %52 = vector.extract_strided_slice %25 {offsets = [0, 0], sizes = [1, 4], strides = [1, 1]} : vector<3x4xf32> to vector<1x4xf32>
    %53 = vector.broadcast %52 : vector<1x4xf32> to vector<16x4xf32>
    %54 = arith.mulf %51, %53 : vector<16x4xf32>
    %55 = vector.extract_strided_slice %25 {offsets = [1, 0], sizes = [1, 4], strides = [1, 1]} : vector<3x4xf32> to vector<1x4xf32>
    %56 = vector.broadcast %55 : vector<1x4xf32> to vector<16x4xf32>
    %57 = arith.addf %54, %56 : vector<16x4xf32>
    %cst_23 = arith.constant 0.000000e+00 : f32
    %58 = vector.broadcast %cst_23 : f32 to vector<16x4xf32>
    %59 = arith.maximumf %57, %58 : vector<16x4xf32>
    %c0_24 = arith.constant 0 : index
    %c0_25 = arith.constant 0 : index
    %c0_26 = arith.constant 0 : index
    %c0_27 = arith.constant 0 : index
    %60 = vector.load %arg4[%c0_24, %c0_25, %c0_26, %c0_27] : memref<2x2x4x4xf32, #tpu.memory_space<vmem>>, vector<1x1x4x4xf32>
    %61 = vector.shape_cast %60 : vector<1x1x4x4xf32> to vector<4x4xf32>
    %62 = vector.extract_strided_slice %59 {offsets = [0, 0], sizes = [16, 1], strides = [1, 1]} : vector<16x4xf32> to vector<16x1xf32>
    %63 = vector.extract_strided_slice %61 {offsets = [0, 0], sizes = [1, 4], strides = [1, 1]} : vector<4x4xf32> to vector<1x4xf32>
    %64 = vector.broadcast %62 : vector<16x1xf32> to vector<16x4xf32>
    %65 = vector.broadcast %63 : vector<1x4xf32> to vector<16x4xf32>
    %66 = arith.mulf %64, %65 : vector<16x4xf32>
    %67 = vector.extract_strided_slice %59 {offsets = [0, 1], sizes = [16, 1], strides = [1, 1]} : vector<16x4xf32> to vector<16x1xf32>
    %68 = vector.extract_strided_slice %61 {offsets = [1, 0], sizes = [1, 4], strides = [1, 1]} : vector<4x4xf32> to vector<1x4xf32>
    %69 = vector.broadcast %67 : vector<16x1xf32> to vector<16x4xf32>
    %70 = vector.broadcast %68 : vector<1x4xf32> to vector<16x4xf32>
    %71 = arith.mulf %69, %70 : vector<16x4xf32>
    %72 = arith.addf %66, %71 : vector<16x4xf32>
    %73 = vector.extract_strided_slice %59 {offsets = [0, 2], sizes = [16, 1], strides = [1, 1]} : vector<16x4xf32> to vector<16x1xf32>
    %74 = vector.extract_strided_slice %61 {offsets = [2, 0], sizes = [1, 4], strides = [1, 1]} : vector<4x4xf32> to vector<1x4xf32>
    %75 = vector.broadcast %73 : vector<16x1xf32> to vector<16x4xf32>
    %76 = vector.broadcast %74 : vector<1x4xf32> to vector<16x4xf32>
    %77 = arith.mulf %75, %76 : vector<16x4xf32>
    %78 = arith.addf %72, %77 : vector<16x4xf32>
    %79 = vector.extract_strided_slice %59 {offsets = [0, 3], sizes = [16, 1], strides = [1, 1]} : vector<16x4xf32> to vector<16x1xf32>
    %80 = vector.extract_strided_slice %61 {offsets = [3, 0], sizes = [1, 4], strides = [1, 1]} : vector<4x4xf32> to vector<1x4xf32>
    %81 = vector.broadcast %79 : vector<16x1xf32> to vector<16x4xf32>
    %82 = vector.broadcast %80 : vector<1x4xf32> to vector<16x4xf32>
    %83 = arith.mulf %81, %82 : vector<16x4xf32>
    %84 = arith.addf %78, %83 : vector<16x4xf32>
    %85 = vector.extract_strided_slice %25 {offsets = [2, 0], sizes = [1, 4], strides = [1, 1]} : vector<3x4xf32> to vector<1x4xf32>
    %86 = vector.broadcast %85 : vector<1x4xf32> to vector<16x4xf32>
    %87 = arith.addf %84, %86 : vector<16x4xf32>
    %88 = arith.mulf %87, %33 : vector<16x4xf32>
    %89 = vector.extract_strided_slice %23 {offsets = [0, 0], sizes = [16, 4], strides = [1, 1]} : vector<48x4xf32> to vector<16x4xf32>
    %90 = vector.extract_strided_slice %23 {offsets = [16, 0], sizes = [16, 4], strides = [1, 1]} : vector<48x4xf32> to vector<16x4xf32>
    %91 = vector.extract_strided_slice %23 {offsets = [32, 0], sizes = [16, 4], strides = [1, 1]} : vector<48x4xf32> to vector<16x4xf32>
    %92 = arith.mulf %89, %89 : vector<16x4xf32>
    %93 = arith.mulf %90, %90 : vector<16x4xf32>
    %94 = arith.addf %92, %93 : vector<16x4xf32>
    %95 = arith.mulf %91, %91 : vector<16x4xf32>
    %96 = arith.addf %94, %95 : vector<16x4xf32>
    %cst_28 = arith.constant 1.000000e-24 : f32
    %97 = vector.broadcast %cst_28 : f32 to vector<16x4xf32>
    %98 = arith.addf %96, %97 : vector<16x4xf32>
    %99 = math.rsqrt %98 : vector<16x4xf32>
    %100 = arith.mulf %96, %99 : vector<16x4xf32>
    %cst_29 = arith.constant dense<0.000000e+00> : vector<16xf32>
    %101 = vector.multi_reduction <add>, %100, %cst_29 [1] : vector<16x4xf32> to vector<16xf32>
    %102 = vector.shape_cast %101 : vector<16xf32> to vector<16x1xf32>
    %cst_30 = arith.constant 4.000000e+00 : f32
    %103 = vector.broadcast %cst_30 : f32 to vector<16x1xf32>
    %104 = arith.divf %102, %103 : vector<16x1xf32>
    %105 = vector.broadcast %104 : vector<16x1xf32> to vector<16x4xf32>
    %106 = arith.subf %100, %105 : vector<16x4xf32>
    %107 = arith.mulf %106, %106 : vector<16x4xf32>
    %cst_31 = arith.constant dense<0.000000e+00> : vector<16xf32>
    %108 = vector.multi_reduction <add>, %107, %cst_31 [1] : vector<16x4xf32> to vector<16xf32>
    %109 = vector.shape_cast %108 : vector<16xf32> to vector<16x1xf32>
    %cst_32 = arith.constant 4.000000e+00 : f32
    %110 = vector.broadcast %cst_32 : f32 to vector<16x1xf32>
    %111 = arith.divf %109, %110 : vector<16x1xf32>
    %112 = vector.broadcast %104 : vector<16x1xf32> to vector<16x4xf32>
    %113 = arith.subf %100, %112 : vector<16x4xf32>
    %cst_33 = arith.constant 9.99999974E-6 : f32
    %114 = vector.broadcast %cst_33 : f32 to vector<16x1xf32>
    %115 = arith.addf %111, %114 : vector<16x1xf32>
    %116 = math.rsqrt %115 : vector<16x1xf32>
    %117 = vector.broadcast %116 : vector<16x1xf32> to vector<16x4xf32>
    %118 = arith.mulf %113, %117 : vector<16x4xf32>
    %119 = vector.extract_strided_slice %27 {offsets = [0, 0], sizes = [1, 4], strides = [1, 1]} : vector<3x4xf32> to vector<1x4xf32>
    %120 = vector.broadcast %119 : vector<1x4xf32> to vector<16x4xf32>
    %121 = arith.mulf %118, %120 : vector<16x4xf32>
    %122 = vector.extract_strided_slice %27 {offsets = [1, 0], sizes = [1, 4], strides = [1, 1]} : vector<3x4xf32> to vector<1x4xf32>
    %123 = vector.broadcast %122 : vector<1x4xf32> to vector<16x4xf32>
    %124 = arith.addf %121, %123 : vector<16x4xf32>
    %cst_34 = arith.constant 0.000000e+00 : f32
    %125 = vector.broadcast %cst_34 : f32 to vector<16x4xf32>
    %126 = arith.maximumf %124, %125 : vector<16x4xf32>
    %c0_35 = arith.constant 0 : index
    %c1_36 = arith.constant 1 : index
    %c0_37 = arith.constant 0 : index
    %c0_38 = arith.constant 0 : index
    %127 = vector.load %arg4[%c0_35, %c1_36, %c0_37, %c0_38] : memref<2x2x4x4xf32, #tpu.memory_space<vmem>>, vector<1x1x4x4xf32>
    %128 = vector.shape_cast %127 : vector<1x1x4x4xf32> to vector<4x4xf32>
    %129 = vector.extract_strided_slice %126 {offsets = [0, 0], sizes = [16, 1], strides = [1, 1]} : vector<16x4xf32> to vector<16x1xf32>
    %130 = vector.extract_strided_slice %128 {offsets = [0, 0], sizes = [1, 4], strides = [1, 1]} : vector<4x4xf32> to vector<1x4xf32>
    %131 = vector.broadcast %129 : vector<16x1xf32> to vector<16x4xf32>
    %132 = vector.broadcast %130 : vector<1x4xf32> to vector<16x4xf32>
    %133 = arith.mulf %131, %132 : vector<16x4xf32>
    %134 = vector.extract_strided_slice %126 {offsets = [0, 1], sizes = [16, 1], strides = [1, 1]} : vector<16x4xf32> to vector<16x1xf32>
    %135 = vector.extract_strided_slice %128 {offsets = [1, 0], sizes = [1, 4], strides = [1, 1]} : vector<4x4xf32> to vector<1x4xf32>
    %136 = vector.broadcast %134 : vector<16x1xf32> to vector<16x4xf32>
    %137 = vector.broadcast %135 : vector<1x4xf32> to vector<16x4xf32>
    %138 = arith.mulf %136, %137 : vector<16x4xf32>
    %139 = arith.addf %133, %138 : vector<16x4xf32>
    %140 = vector.extract_strided_slice %126 {offsets = [0, 2], sizes = [16, 1], strides = [1, 1]} : vector<16x4xf32> to vector<16x1xf32>
    %141 = vector.extract_strided_slice %128 {offsets = [2, 0], sizes = [1, 4], strides = [1, 1]} : vector<4x4xf32> to vector<1x4xf32>
    %142 = vector.broadcast %140 : vector<16x1xf32> to vector<16x4xf32>
    %143 = vector.broadcast %141 : vector<1x4xf32> to vector<16x4xf32>
    %144 = arith.mulf %142, %143 : vector<16x4xf32>
    %145 = arith.addf %139, %144 : vector<16x4xf32>
    %146 = vector.extract_strided_slice %126 {offsets = [0, 3], sizes = [16, 1], strides = [1, 1]} : vector<16x4xf32> to vector<16x1xf32>
    %147 = vector.extract_strided_slice %128 {offsets = [3, 0], sizes = [1, 4], strides = [1, 1]} : vector<4x4xf32> to vector<1x4xf32>
    %148 = vector.broadcast %146 : vector<16x1xf32> to vector<16x4xf32>
    %149 = vector.broadcast %147 : vector<1x4xf32> to vector<16x4xf32>
    %150 = arith.mulf %148, %149 : vector<16x4xf32>
    %151 = arith.addf %145, %150 : vector<16x4xf32>
    %152 = vector.extract_strided_slice %27 {offsets = [2, 0], sizes = [1, 4], strides = [1, 1]} : vector<3x4xf32> to vector<1x4xf32>
    %153 = vector.broadcast %152 : vector<1x4xf32> to vector<16x4xf32>
    %154 = arith.addf %151, %153 : vector<16x4xf32>
    %155 = arith.mulf %154, %99 : vector<16x4xf32>
    %156 = tpu.concatenate %155, %155, %155 in 0 : vector<16x4xf32>, vector<16x4xf32>, vector<16x4xf32> -> vector<48x4xf32>
    %157 = arith.mulf %23, %156 : vector<48x4xf32>
    %c1_39 = arith.constant 1 : index
    %c0_40 = arith.constant 0 : index
    %c0_41 = arith.constant 0 : index
    %c0_42 = arith.constant 0 : index
    %158 = vector.load %arg3[%c1_39, %c0_40, %c0_41, %c0_42] : memref<2x2x4x4xf32, #tpu.memory_space<vmem>>, vector<1x1x4x4xf32>
    %159 = vector.shape_cast %158 : vector<1x1x4x4xf32> to vector<4x4xf32>
    %160 = vector.extract_strided_slice %88 {offsets = [0, 0], sizes = [16, 1], strides = [1, 1]} : vector<16x4xf32> to vector<16x1xf32>
    %161 = vector.extract_strided_slice %159 {offsets = [0, 0], sizes = [1, 4], strides = [1, 1]} : vector<4x4xf32> to vector<1x4xf32>
    %162 = vector.broadcast %160 : vector<16x1xf32> to vector<16x4xf32>
    %163 = vector.broadcast %161 : vector<1x4xf32> to vector<16x4xf32>
    %164 = arith.mulf %162, %163 : vector<16x4xf32>
    %165 = vector.extract_strided_slice %88 {offsets = [0, 1], sizes = [16, 1], strides = [1, 1]} : vector<16x4xf32> to vector<16x1xf32>
    %166 = vector.extract_strided_slice %159 {offsets = [1, 0], sizes = [1, 4], strides = [1, 1]} : vector<4x4xf32> to vector<1x4xf32>
    %167 = vector.broadcast %165 : vector<16x1xf32> to vector<16x4xf32>
    %168 = vector.broadcast %166 : vector<1x4xf32> to vector<16x4xf32>
    %169 = arith.mulf %167, %168 : vector<16x4xf32>
    %170 = arith.addf %164, %169 : vector<16x4xf32>
    %171 = vector.extract_strided_slice %88 {offsets = [0, 2], sizes = [16, 1], strides = [1, 1]} : vector<16x4xf32> to vector<16x1xf32>
    %172 = vector.extract_strided_slice %159 {offsets = [2, 0], sizes = [1, 4], strides = [1, 1]} : vector<4x4xf32> to vector<1x4xf32>
    %173 = vector.broadcast %171 : vector<16x1xf32> to vector<16x4xf32>
    %174 = vector.broadcast %172 : vector<1x4xf32> to vector<16x4xf32>
    %175 = arith.mulf %173, %174 : vector<16x4xf32>
    %176 = arith.addf %170, %175 : vector<16x4xf32>
    %177 = vector.extract_strided_slice %88 {offsets = [0, 3], sizes = [16, 1], strides = [1, 1]} : vector<16x4xf32> to vector<16x1xf32>
    %178 = vector.extract_strided_slice %159 {offsets = [3, 0], sizes = [1, 4], strides = [1, 1]} : vector<4x4xf32> to vector<1x4xf32>
    %179 = vector.broadcast %177 : vector<16x1xf32> to vector<16x4xf32>
    %180 = vector.broadcast %178 : vector<1x4xf32> to vector<16x4xf32>
    %181 = arith.mulf %179, %180 : vector<16x4xf32>
    %182 = arith.addf %176, %181 : vector<16x4xf32>
    %c1_43 = arith.constant 1 : index
    %c1_44 = arith.constant 1 : index
    %c0_45 = arith.constant 0 : index
    %c0_46 = arith.constant 0 : index
    %183 = vector.load %arg3[%c1_43, %c1_44, %c0_45, %c0_46] : memref<2x2x4x4xf32, #tpu.memory_space<vmem>>, vector<1x1x4x4xf32>
    %184 = vector.shape_cast %183 : vector<1x1x4x4xf32> to vector<4x4xf32>
    %185 = vector.extract_strided_slice %157 {offsets = [0, 0], sizes = [48, 1], strides = [1, 1]} : vector<48x4xf32> to vector<48x1xf32>
    %186 = vector.extract_strided_slice %184 {offsets = [0, 0], sizes = [1, 4], strides = [1, 1]} : vector<4x4xf32> to vector<1x4xf32>
    %187 = vector.broadcast %185 : vector<48x1xf32> to vector<48x4xf32>
    %188 = vector.broadcast %186 : vector<1x4xf32> to vector<48x4xf32>
    %189 = arith.mulf %187, %188 : vector<48x4xf32>
    %190 = vector.extract_strided_slice %157 {offsets = [0, 1], sizes = [48, 1], strides = [1, 1]} : vector<48x4xf32> to vector<48x1xf32>
    %191 = vector.extract_strided_slice %184 {offsets = [1, 0], sizes = [1, 4], strides = [1, 1]} : vector<4x4xf32> to vector<1x4xf32>
    %192 = vector.broadcast %190 : vector<48x1xf32> to vector<48x4xf32>
    %193 = vector.broadcast %191 : vector<1x4xf32> to vector<48x4xf32>
    %194 = arith.mulf %192, %193 : vector<48x4xf32>
    %195 = arith.addf %189, %194 : vector<48x4xf32>
    %196 = vector.extract_strided_slice %157 {offsets = [0, 2], sizes = [48, 1], strides = [1, 1]} : vector<48x4xf32> to vector<48x1xf32>
    %197 = vector.extract_strided_slice %184 {offsets = [2, 0], sizes = [1, 4], strides = [1, 1]} : vector<4x4xf32> to vector<1x4xf32>
    %198 = vector.broadcast %196 : vector<48x1xf32> to vector<48x4xf32>
    %199 = vector.broadcast %197 : vector<1x4xf32> to vector<48x4xf32>
    %200 = arith.mulf %198, %199 : vector<48x4xf32>
    %201 = arith.addf %195, %200 : vector<48x4xf32>
    %202 = vector.extract_strided_slice %157 {offsets = [0, 3], sizes = [48, 1], strides = [1, 1]} : vector<48x4xf32> to vector<48x1xf32>
    %203 = vector.extract_strided_slice %184 {offsets = [3, 0], sizes = [1, 4], strides = [1, 1]} : vector<4x4xf32> to vector<1x4xf32>
    %204 = vector.broadcast %202 : vector<48x1xf32> to vector<48x4xf32>
    %205 = vector.broadcast %203 : vector<1x4xf32> to vector<48x4xf32>
    %206 = arith.mulf %204, %205 : vector<48x4xf32>
    %207 = arith.addf %201, %206 : vector<48x4xf32>
    %c1_47 = arith.constant 1 : index
    %c0_48 = arith.constant 0 : index
    %c0_49 = arith.constant 0 : index
    %c0_50 = arith.constant 0 : index
    %208 = vector.load %arg5[%c1_47, %c0_48, %c0_49, %c0_50] : memref<2x2x3x4xf32, #tpu.memory_space<vmem>>, vector<1x1x3x4xf32>
    %209 = vector.shape_cast %208 : vector<1x1x3x4xf32> to vector<3x4xf32>
    %c1_51 = arith.constant 1 : index
    %c1_52 = arith.constant 1 : index
    %c0_53 = arith.constant 0 : index
    %c0_54 = arith.constant 0 : index
    %210 = vector.load %arg5[%c1_51, %c1_52, %c0_53, %c0_54] : memref<2x2x3x4xf32, #tpu.memory_space<vmem>>, vector<1x1x3x4xf32>
    %211 = vector.shape_cast %210 : vector<1x1x3x4xf32> to vector<3x4xf32>
    %212 = arith.mulf %182, %182 : vector<16x4xf32>
    %cst_55 = arith.constant 1.000000e-24 : f32
    %213 = vector.broadcast %cst_55 : f32 to vector<16x4xf32>
    %214 = arith.addf %212, %213 : vector<16x4xf32>
    %215 = math.rsqrt %214 : vector<16x4xf32>
    %216 = arith.mulf %212, %215 : vector<16x4xf32>
    %217 = arith.mulf %182, %215 : vector<16x4xf32>
    %cst_56 = arith.constant dense<0.000000e+00> : vector<16xf32>
    %218 = vector.multi_reduction <add>, %216, %cst_56 [1] : vector<16x4xf32> to vector<16xf32>
    %219 = vector.shape_cast %218 : vector<16xf32> to vector<16x1xf32>
    %cst_57 = arith.constant 4.000000e+00 : f32
    %220 = vector.broadcast %cst_57 : f32 to vector<16x1xf32>
    %221 = arith.divf %219, %220 : vector<16x1xf32>
    %222 = vector.broadcast %221 : vector<16x1xf32> to vector<16x4xf32>
    %223 = arith.subf %216, %222 : vector<16x4xf32>
    %224 = arith.mulf %223, %223 : vector<16x4xf32>
    %cst_58 = arith.constant dense<0.000000e+00> : vector<16xf32>
    %225 = vector.multi_reduction <add>, %224, %cst_58 [1] : vector<16x4xf32> to vector<16xf32>
    %226 = vector.shape_cast %225 : vector<16xf32> to vector<16x1xf32>
    %cst_59 = arith.constant 4.000000e+00 : f32
    %227 = vector.broadcast %cst_59 : f32 to vector<16x1xf32>
    %228 = arith.divf %226, %227 : vector<16x1xf32>
    %229 = vector.broadcast %221 : vector<16x1xf32> to vector<16x4xf32>
    %230 = arith.subf %216, %229 : vector<16x4xf32>
    %cst_60 = arith.constant 9.99999974E-6 : f32
    %231 = vector.broadcast %cst_60 : f32 to vector<16x1xf32>
    %232 = arith.addf %228, %231 : vector<16x1xf32>
    %233 = math.rsqrt %232 : vector<16x1xf32>
    %234 = vector.broadcast %233 : vector<16x1xf32> to vector<16x4xf32>
    %235 = arith.mulf %230, %234 : vector<16x4xf32>
    %236 = vector.extract_strided_slice %209 {offsets = [0, 0], sizes = [1, 4], strides = [1, 1]} : vector<3x4xf32> to vector<1x4xf32>
    %237 = vector.broadcast %236 : vector<1x4xf32> to vector<16x4xf32>
    %238 = arith.mulf %235, %237 : vector<16x4xf32>
    %239 = vector.extract_strided_slice %209 {offsets = [1, 0], sizes = [1, 4], strides = [1, 1]} : vector<3x4xf32> to vector<1x4xf32>
    %240 = vector.broadcast %239 : vector<1x4xf32> to vector<16x4xf32>
    %241 = arith.addf %238, %240 : vector<16x4xf32>
    %cst_61 = arith.constant 0.000000e+00 : f32
    %242 = vector.broadcast %cst_61 : f32 to vector<16x4xf32>
    %243 = arith.maximumf %241, %242 : vector<16x4xf32>
    %c1_62 = arith.constant 1 : index
    %c0_63 = arith.constant 0 : index
    %c0_64 = arith.constant 0 : index
    %c0_65 = arith.constant 0 : index
    %244 = vector.load %arg4[%c1_62, %c0_63, %c0_64, %c0_65] : memref<2x2x4x4xf32, #tpu.memory_space<vmem>>, vector<1x1x4x4xf32>
    %245 = vector.shape_cast %244 : vector<1x1x4x4xf32> to vector<4x4xf32>
    %246 = vector.extract_strided_slice %243 {offsets = [0, 0], sizes = [16, 1], strides = [1, 1]} : vector<16x4xf32> to vector<16x1xf32>
    %247 = vector.extract_strided_slice %245 {offsets = [0, 0], sizes = [1, 4], strides = [1, 1]} : vector<4x4xf32> to vector<1x4xf32>
    %248 = vector.broadcast %246 : vector<16x1xf32> to vector<16x4xf32>
    %249 = vector.broadcast %247 : vector<1x4xf32> to vector<16x4xf32>
    %250 = arith.mulf %248, %249 : vector<16x4xf32>
    %251 = vector.extract_strided_slice %243 {offsets = [0, 1], sizes = [16, 1], strides = [1, 1]} : vector<16x4xf32> to vector<16x1xf32>
    %252 = vector.extract_strided_slice %245 {offsets = [1, 0], sizes = [1, 4], strides = [1, 1]} : vector<4x4xf32> to vector<1x4xf32>
    %253 = vector.broadcast %251 : vector<16x1xf32> to vector<16x4xf32>
    %254 = vector.broadcast %252 : vector<1x4xf32> to vector<16x4xf32>
    %255 = arith.mulf %253, %254 : vector<16x4xf32>
    %256 = arith.addf %250, %255 : vector<16x4xf32>
    %257 = vector.extract_strided_slice %243 {offsets = [0, 2], sizes = [16, 1], strides = [1, 1]} : vector<16x4xf32> to vector<16x1xf32>
    %258 = vector.extract_strided_slice %245 {offsets = [2, 0], sizes = [1, 4], strides = [1, 1]} : vector<4x4xf32> to vector<1x4xf32>
    %259 = vector.broadcast %257 : vector<16x1xf32> to vector<16x4xf32>
    %260 = vector.broadcast %258 : vector<1x4xf32> to vector<16x4xf32>
    %261 = arith.mulf %259, %260 : vector<16x4xf32>
    %262 = arith.addf %256, %261 : vector<16x4xf32>
    %263 = vector.extract_strided_slice %243 {offsets = [0, 3], sizes = [16, 1], strides = [1, 1]} : vector<16x4xf32> to vector<16x1xf32>
    %264 = vector.extract_strided_slice %245 {offsets = [3, 0], sizes = [1, 4], strides = [1, 1]} : vector<4x4xf32> to vector<1x4xf32>
    %265 = vector.broadcast %263 : vector<16x1xf32> to vector<16x4xf32>
    %266 = vector.broadcast %264 : vector<1x4xf32> to vector<16x4xf32>
    %267 = arith.mulf %265, %266 : vector<16x4xf32>
    %268 = arith.addf %262, %267 : vector<16x4xf32>
    %269 = vector.extract_strided_slice %209 {offsets = [2, 0], sizes = [1, 4], strides = [1, 1]} : vector<3x4xf32> to vector<1x4xf32>
    %270 = vector.broadcast %269 : vector<1x4xf32> to vector<16x4xf32>
    %271 = arith.addf %268, %270 : vector<16x4xf32>
    %272 = arith.mulf %271, %217 : vector<16x4xf32>
    %273 = vector.extract_strided_slice %207 {offsets = [0, 0], sizes = [16, 4], strides = [1, 1]} : vector<48x4xf32> to vector<16x4xf32>
    %274 = vector.extract_strided_slice %207 {offsets = [16, 0], sizes = [16, 4], strides = [1, 1]} : vector<48x4xf32> to vector<16x4xf32>
    %275 = vector.extract_strided_slice %207 {offsets = [32, 0], sizes = [16, 4], strides = [1, 1]} : vector<48x4xf32> to vector<16x4xf32>
    %276 = arith.mulf %273, %273 : vector<16x4xf32>
    %277 = arith.mulf %274, %274 : vector<16x4xf32>
    %278 = arith.addf %276, %277 : vector<16x4xf32>
    %279 = arith.mulf %275, %275 : vector<16x4xf32>
    %280 = arith.addf %278, %279 : vector<16x4xf32>
    %cst_66 = arith.constant 1.000000e-24 : f32
    %281 = vector.broadcast %cst_66 : f32 to vector<16x4xf32>
    %282 = arith.addf %280, %281 : vector<16x4xf32>
    %283 = math.rsqrt %282 : vector<16x4xf32>
    %284 = arith.mulf %280, %283 : vector<16x4xf32>
    %cst_67 = arith.constant dense<0.000000e+00> : vector<16xf32>
    %285 = vector.multi_reduction <add>, %284, %cst_67 [1] : vector<16x4xf32> to vector<16xf32>
    %286 = vector.shape_cast %285 : vector<16xf32> to vector<16x1xf32>
    %cst_68 = arith.constant 4.000000e+00 : f32
    %287 = vector.broadcast %cst_68 : f32 to vector<16x1xf32>
    %288 = arith.divf %286, %287 : vector<16x1xf32>
    %289 = vector.broadcast %288 : vector<16x1xf32> to vector<16x4xf32>
    %290 = arith.subf %284, %289 : vector<16x4xf32>
    %291 = arith.mulf %290, %290 : vector<16x4xf32>
    %cst_69 = arith.constant dense<0.000000e+00> : vector<16xf32>
    %292 = vector.multi_reduction <add>, %291, %cst_69 [1] : vector<16x4xf32> to vector<16xf32>
    %293 = vector.shape_cast %292 : vector<16xf32> to vector<16x1xf32>
    %cst_70 = arith.constant 4.000000e+00 : f32
    %294 = vector.broadcast %cst_70 : f32 to vector<16x1xf32>
    %295 = arith.divf %293, %294 : vector<16x1xf32>
    %296 = vector.broadcast %288 : vector<16x1xf32> to vector<16x4xf32>
    %297 = arith.subf %284, %296 : vector<16x4xf32>
    %cst_71 = arith.constant 9.99999974E-6 : f32
    %298 = vector.broadcast %cst_71 : f32 to vector<16x1xf32>
    %299 = arith.addf %295, %298 : vector<16x1xf32>
    %300 = math.rsqrt %299 : vector<16x1xf32>
    %301 = vector.broadcast %300 : vector<16x1xf32> to vector<16x4xf32>
    %302 = arith.mulf %297, %301 : vector<16x4xf32>
    %303 = vector.extract_strided_slice %211 {offsets = [0, 0], sizes = [1, 4], strides = [1, 1]} : vector<3x4xf32> to vector<1x4xf32>
    %304 = vector.broadcast %303 : vector<1x4xf32> to vector<16x4xf32>
    %305 = arith.mulf %302, %304 : vector<16x4xf32>
    %306 = vector.extract_strided_slice %211 {offsets = [1, 0], sizes = [1, 4], strides = [1, 1]} : vector<3x4xf32> to vector<1x4xf32>
    %307 = vector.broadcast %306 : vector<1x4xf32> to vector<16x4xf32>
    %308 = arith.addf %305, %307 : vector<16x4xf32>
    %cst_72 = arith.constant 0.000000e+00 : f32
    %309 = vector.broadcast %cst_72 : f32 to vector<16x4xf32>
    %310 = arith.maximumf %308, %309 : vector<16x4xf32>
    %c1_73 = arith.constant 1 : index
    %c1_74 = arith.constant 1 : index
    %c0_75 = arith.constant 0 : index
    %c0_76 = arith.constant 0 : index
    %311 = vector.load %arg4[%c1_73, %c1_74, %c0_75, %c0_76] : memref<2x2x4x4xf32, #tpu.memory_space<vmem>>, vector<1x1x4x4xf32>
    %312 = vector.shape_cast %311 : vector<1x1x4x4xf32> to vector<4x4xf32>
    %313 = vector.extract_strided_slice %310 {offsets = [0, 0], sizes = [16, 1], strides = [1, 1]} : vector<16x4xf32> to vector<16x1xf32>
    %314 = vector.extract_strided_slice %312 {offsets = [0, 0], sizes = [1, 4], strides = [1, 1]} : vector<4x4xf32> to vector<1x4xf32>
    %315 = vector.broadcast %313 : vector<16x1xf32> to vector<16x4xf32>
    %316 = vector.broadcast %314 : vector<1x4xf32> to vector<16x4xf32>
    %317 = arith.mulf %315, %316 : vector<16x4xf32>
    %318 = vector.extract_strided_slice %310 {offsets = [0, 1], sizes = [16, 1], strides = [1, 1]} : vector<16x4xf32> to vector<16x1xf32>
    %319 = vector.extract_strided_slice %312 {offsets = [1, 0], sizes = [1, 4], strides = [1, 1]} : vector<4x4xf32> to vector<1x4xf32>
    %320 = vector.broadcast %318 : vector<16x1xf32> to vector<16x4xf32>
    %321 = vector.broadcast %319 : vector<1x4xf32> to vector<16x4xf32>
    %322 = arith.mulf %320, %321 : vector<16x4xf32>
    %323 = arith.addf %317, %322 : vector<16x4xf32>
    %324 = vector.extract_strided_slice %310 {offsets = [0, 2], sizes = [16, 1], strides = [1, 1]} : vector<16x4xf32> to vector<16x1xf32>
    %325 = vector.extract_strided_slice %312 {offsets = [2, 0], sizes = [1, 4], strides = [1, 1]} : vector<4x4xf32> to vector<1x4xf32>
    %326 = vector.broadcast %324 : vector<16x1xf32> to vector<16x4xf32>
    %327 = vector.broadcast %325 : vector<1x4xf32> to vector<16x4xf32>
    %328 = arith.mulf %326, %327 : vector<16x4xf32>
    %329 = arith.addf %323, %328 : vector<16x4xf32>
    %330 = vector.extract_strided_slice %310 {offsets = [0, 3], sizes = [16, 1], strides = [1, 1]} : vector<16x4xf32> to vector<16x1xf32>
    %331 = vector.extract_strided_slice %312 {offsets = [3, 0], sizes = [1, 4], strides = [1, 1]} : vector<4x4xf32> to vector<1x4xf32>
    %332 = vector.broadcast %330 : vector<16x1xf32> to vector<16x4xf32>
    %333 = vector.broadcast %331 : vector<1x4xf32> to vector<16x4xf32>
    %334 = arith.mulf %332, %333 : vector<16x4xf32>
    %335 = arith.addf %329, %334 : vector<16x4xf32>
    %336 = vector.extract_strided_slice %211 {offsets = [2, 0], sizes = [1, 4], strides = [1, 1]} : vector<3x4xf32> to vector<1x4xf32>
    %337 = vector.broadcast %336 : vector<1x4xf32> to vector<16x4xf32>
    %338 = arith.addf %335, %337 : vector<16x4xf32>
    %339 = arith.mulf %338, %283 : vector<16x4xf32>
    %340 = tpu.concatenate %339, %339, %339 in 0 : vector<16x4xf32>, vector<16x4xf32>, vector<16x4xf32> -> vector<48x4xf32>
    %341 = arith.mulf %207, %340 : vector<48x4xf32>
    %342 = vector.extract_strided_slice %272 {offsets = [0, 0], sizes = [8, 4], strides = [1, 1]} : vector<16x4xf32> to vector<8x4xf32>
    %cst_77 = arith.constant dense<0.000000e+00> : vector<4xf32>
    %343 = vector.multi_reduction <add>, %342, %cst_77 [0] : vector<8x4xf32> to vector<4xf32>
    %344 = vector.shape_cast %343 : vector<4xf32> to vector<1x4xf32>
    %cst_78 = arith.constant 8.000000e+00 : f32
    %345 = vector.broadcast %cst_78 : f32 to vector<1x4xf32>
    %346 = arith.divf %344, %345 : vector<1x4xf32>
    %347 = vector.extract_strided_slice %272 {offsets = [8, 0], sizes = [8, 4], strides = [1, 1]} : vector<16x4xf32> to vector<8x4xf32>
    %cst_79 = arith.constant dense<0.000000e+00> : vector<4xf32>
    %348 = vector.multi_reduction <add>, %347, %cst_79 [0] : vector<8x4xf32> to vector<4xf32>
    %349 = vector.shape_cast %348 : vector<4xf32> to vector<1x4xf32>
    %cst_80 = arith.constant 8.000000e+00 : f32
    %350 = vector.broadcast %cst_80 : f32 to vector<1x4xf32>
    %351 = arith.divf %349, %350 : vector<1x4xf32>
    %352 = tpu.concatenate %346, %351 in 0 : vector<1x4xf32>, vector<1x4xf32> -> vector<2x4xf32>
    %353 = vector.extract_strided_slice %341 {offsets = [0, 0], sizes = [8, 4], strides = [1, 1]} : vector<48x4xf32> to vector<8x4xf32>
    %cst_81 = arith.constant dense<0.000000e+00> : vector<4xf32>
    %354 = vector.multi_reduction <add>, %353, %cst_81 [0] : vector<8x4xf32> to vector<4xf32>
    %355 = vector.shape_cast %354 : vector<4xf32> to vector<1x4xf32>
    %cst_82 = arith.constant 8.000000e+00 : f32
    %356 = vector.broadcast %cst_82 : f32 to vector<1x4xf32>
    %357 = arith.divf %355, %356 : vector<1x4xf32>
    %358 = vector.extract_strided_slice %341 {offsets = [8, 0], sizes = [8, 4], strides = [1, 1]} : vector<48x4xf32> to vector<8x4xf32>
    %cst_83 = arith.constant dense<0.000000e+00> : vector<4xf32>
    %359 = vector.multi_reduction <add>, %358, %cst_83 [0] : vector<8x4xf32> to vector<4xf32>
    %360 = vector.shape_cast %359 : vector<4xf32> to vector<1x4xf32>
    %cst_84 = arith.constant 8.000000e+00 : f32
    %361 = vector.broadcast %cst_84 : f32 to vector<1x4xf32>
    %362 = arith.divf %360, %361 : vector<1x4xf32>
    %363 = vector.extract_strided_slice %341 {offsets = [16, 0], sizes = [8, 4], strides = [1, 1]} : vector<48x4xf32> to vector<8x4xf32>
    %cst_85 = arith.constant dense<0.000000e+00> : vector<4xf32>
    %364 = vector.multi_reduction <add>, %363, %cst_85 [0] : vector<8x4xf32> to vector<4xf32>
    %365 = vector.shape_cast %364 : vector<4xf32> to vector<1x4xf32>
    %cst_86 = arith.constant 8.000000e+00 : f32
    %366 = vector.broadcast %cst_86 : f32 to vector<1x4xf32>
    %367 = arith.divf %365, %366 : vector<1x4xf32>
    %368 = vector.extract_strided_slice %341 {offsets = [24, 0], sizes = [8, 4], strides = [1, 1]} : vector<48x4xf32> to vector<8x4xf32>
    %cst_87 = arith.constant dense<0.000000e+00> : vector<4xf32>
    %369 = vector.multi_reduction <add>, %368, %cst_87 [0] : vector<8x4xf32> to vector<4xf32>
    %370 = vector.shape_cast %369 : vector<4xf32> to vector<1x4xf32>
    %cst_88 = arith.constant 8.000000e+00 : f32
    %371 = vector.broadcast %cst_88 : f32 to vector<1x4xf32>
    %372 = arith.divf %370, %371 : vector<1x4xf32>
    %373 = vector.extract_strided_slice %341 {offsets = [32, 0], sizes = [8, 4], strides = [1, 1]} : vector<48x4xf32> to vector<8x4xf32>
    %cst_89 = arith.constant dense<0.000000e+00> : vector<4xf32>
    %374 = vector.multi_reduction <add>, %373, %cst_89 [0] : vector<8x4xf32> to vector<4xf32>
    %375 = vector.shape_cast %374 : vector<4xf32> to vector<1x4xf32>
    %cst_90 = arith.constant 8.000000e+00 : f32
    %376 = vector.broadcast %cst_90 : f32 to vector<1x4xf32>
    %377 = arith.divf %375, %376 : vector<1x4xf32>
    %378 = vector.extract_strided_slice %341 {offsets = [40, 0], sizes = [8, 4], strides = [1, 1]} : vector<48x4xf32> to vector<8x4xf32>
    %cst_91 = arith.constant dense<0.000000e+00> : vector<4xf32>
    %379 = vector.multi_reduction <add>, %378, %cst_91 [0] : vector<8x4xf32> to vector<4xf32>
    %380 = vector.shape_cast %379 : vector<4xf32> to vector<1x4xf32>
    %cst_92 = arith.constant 8.000000e+00 : f32
    %381 = vector.broadcast %cst_92 : f32 to vector<1x4xf32>
    %382 = arith.divf %380, %381 : vector<1x4xf32>
    %383 = tpu.concatenate %357, %362, %367, %372, %377, %382 in 0 : vector<1x4xf32>, vector<1x4xf32>, vector<1x4xf32>, vector<1x4xf32>, vector<1x4xf32>, vector<1x4xf32> -> vector<6x4xf32>
    %c0_93 = arith.constant 0 : index
    %c0_94 = arith.constant 0 : index
    %c0_95 = arith.constant 0 : index
    %384 = vector.load %arg6[%c0_93, %c0_94, %c0_95] : memref<2x4x2xf32, #tpu.memory_space<vmem>>, vector<1x4x2xf32>
    %385 = vector.shape_cast %384 : vector<1x4x2xf32> to vector<4x2xf32>
    %386 = vector.extract_strided_slice %352 {offsets = [0, 0], sizes = [2, 1], strides = [1, 1]} : vector<2x4xf32> to vector<2x1xf32>
    %387 = vector.extract_strided_slice %385 {offsets = [0, 0], sizes = [1, 2], strides = [1, 1]} : vector<4x2xf32> to vector<1x2xf32>
    %388 = vector.broadcast %386 : vector<2x1xf32> to vector<2x2xf32>
    %389 = vector.broadcast %387 : vector<1x2xf32> to vector<2x2xf32>
    %390 = arith.mulf %388, %389 : vector<2x2xf32>
    %391 = vector.extract_strided_slice %352 {offsets = [0, 1], sizes = [2, 1], strides = [1, 1]} : vector<2x4xf32> to vector<2x1xf32>
    %392 = vector.extract_strided_slice %385 {offsets = [1, 0], sizes = [1, 2], strides = [1, 1]} : vector<4x2xf32> to vector<1x2xf32>
    %393 = vector.broadcast %391 : vector<2x1xf32> to vector<2x2xf32>
    %394 = vector.broadcast %392 : vector<1x2xf32> to vector<2x2xf32>
    %395 = arith.mulf %393, %394 : vector<2x2xf32>
    %396 = arith.addf %390, %395 : vector<2x2xf32>
    %397 = vector.extract_strided_slice %352 {offsets = [0, 2], sizes = [2, 1], strides = [1, 1]} : vector<2x4xf32> to vector<2x1xf32>
    %398 = vector.extract_strided_slice %385 {offsets = [2, 0], sizes = [1, 2], strides = [1, 1]} : vector<4x2xf32> to vector<1x2xf32>
    %399 = vector.broadcast %397 : vector<2x1xf32> to vector<2x2xf32>
    %400 = vector.broadcast %398 : vector<1x2xf32> to vector<2x2xf32>
    %401 = arith.mulf %399, %400 : vector<2x2xf32>
    %402 = arith.addf %396, %401 : vector<2x2xf32>
    %403 = vector.extract_strided_slice %352 {offsets = [0, 3], sizes = [2, 1], strides = [1, 1]} : vector<2x4xf32> to vector<2x1xf32>
    %404 = vector.extract_strided_slice %385 {offsets = [3, 0], sizes = [1, 2], strides = [1, 1]} : vector<4x2xf32> to vector<1x2xf32>
    %405 = vector.broadcast %403 : vector<2x1xf32> to vector<2x2xf32>
    %406 = vector.broadcast %404 : vector<1x2xf32> to vector<2x2xf32>
    %407 = arith.mulf %405, %406 : vector<2x2xf32>
    %408 = arith.addf %402, %407 : vector<2x2xf32>
    %c1_96 = arith.constant 1 : index
    %c0_97 = arith.constant 0 : index
    %c0_98 = arith.constant 0 : index
    %409 = vector.load %arg6[%c1_96, %c0_97, %c0_98] : memref<2x4x2xf32, #tpu.memory_space<vmem>>, vector<1x4x2xf32>
    %410 = vector.shape_cast %409 : vector<1x4x2xf32> to vector<4x2xf32>
    %411 = vector.extract_strided_slice %383 {offsets = [0, 0], sizes = [6, 1], strides = [1, 1]} : vector<6x4xf32> to vector<6x1xf32>
    %412 = vector.extract_strided_slice %410 {offsets = [0, 0], sizes = [1, 2], strides = [1, 1]} : vector<4x2xf32> to vector<1x2xf32>
    %413 = vector.broadcast %411 : vector<6x1xf32> to vector<6x2xf32>
    %414 = vector.broadcast %412 : vector<1x2xf32> to vector<6x2xf32>
    %415 = arith.mulf %413, %414 : vector<6x2xf32>
    %416 = vector.extract_strided_slice %383 {offsets = [0, 1], sizes = [6, 1], strides = [1, 1]} : vector<6x4xf32> to vector<6x1xf32>
    %417 = vector.extract_strided_slice %410 {offsets = [1, 0], sizes = [1, 2], strides = [1, 1]} : vector<4x2xf32> to vector<1x2xf32>
    %418 = vector.broadcast %416 : vector<6x1xf32> to vector<6x2xf32>
    %419 = vector.broadcast %417 : vector<1x2xf32> to vector<6x2xf32>
    %420 = arith.mulf %418, %419 : vector<6x2xf32>
    %421 = arith.addf %415, %420 : vector<6x2xf32>
    %422 = vector.extract_strided_slice %383 {offsets = [0, 2], sizes = [6, 1], strides = [1, 1]} : vector<6x4xf32> to vector<6x1xf32>
    %423 = vector.extract_strided_slice %410 {offsets = [2, 0], sizes = [1, 2], strides = [1, 1]} : vector<4x2xf32> to vector<1x2xf32>
    %424 = vector.broadcast %422 : vector<6x1xf32> to vector<6x2xf32>
    %425 = vector.broadcast %423 : vector<1x2xf32> to vector<6x2xf32>
    %426 = arith.mulf %424, %425 : vector<6x2xf32>
    %427 = arith.addf %421, %426 : vector<6x2xf32>
    %428 = vector.extract_strided_slice %383 {offsets = [0, 3], sizes = [6, 1], strides = [1, 1]} : vector<6x4xf32> to vector<6x1xf32>
    %429 = vector.extract_strided_slice %410 {offsets = [3, 0], sizes = [1, 2], strides = [1, 1]} : vector<4x2xf32> to vector<1x2xf32>
    %430 = vector.broadcast %428 : vector<6x1xf32> to vector<6x2xf32>
    %431 = vector.broadcast %429 : vector<1x2xf32> to vector<6x2xf32>
    %432 = arith.mulf %430, %431 : vector<6x2xf32>
    %433 = arith.addf %427, %432 : vector<6x2xf32>
    %434 = tpu.concatenate %408, %433 in 0 : vector<2x2xf32>, vector<6x2xf32> -> vector<8x2xf32>
    %c0_99 = arith.constant 0 : index
    %c0_100 = arith.constant 0 : index
    %435 = vector.load %arg7[%c0_99, %c0_100] : memref<8x2xf32, #tpu.memory_space<vmem>>, vector<8x2xf32>
    tpu.vector_store %arg7[%c0_99, %c0_100], %434 {strides = array<i32>} : memref<8x2xf32, #tpu.memory_space<vmem>>, vector<8x2xf32>,
    return
  }
  func.func @transform_0(%arg0: i32) -> (i32, i32) {
    %c0_i32 = arith.constant 0 : i32
    %c0_i32_0 = arith.constant 0 : i32
    %c0_i32_1 = arith.constant 0 : i32
    return %c0_i32, %c0_i32_0 : i32, i32
  }
  func.func @transform_1(%arg0: i32) -> (i32, i32) {
    %c0_i32 = arith.constant 0 : i32
    %c0_i32_0 = arith.constant 0 : i32
    %c0_i32_1 = arith.constant 0 : i32
    return %c0_i32, %c0_i32_0 : i32, i32
  }
  func.func @transform_2(%arg0: i32) -> (i32, i32, i32, i32) {
    %c0_i32 = arith.constant 0 : i32
    %c0_i32_0 = arith.constant 0 : i32
    %c0_i32_1 = arith.constant 0 : i32
    %c0_i32_2 = arith.constant 0 : i32
    %c0_i32_3 = arith.constant 0 : i32
    return %c0_i32, %c0_i32_0, %c0_i32_1, %c0_i32_2 : i32, i32, i32, i32
  }
  func.func @transform_3(%arg0: i32) -> (i32, i32, i32, i32) {
    %c0_i32 = arith.constant 0 : i32
    %c0_i32_0 = arith.constant 0 : i32
    %c0_i32_1 = arith.constant 0 : i32
    %c0_i32_2 = arith.constant 0 : i32
    %c0_i32_3 = arith.constant 0 : i32
    return %c0_i32, %c0_i32_0, %c0_i32_1, %c0_i32_2 : i32, i32, i32, i32
  }
  func.func @transform_4(%arg0: i32) -> (i32, i32, i32, i32) {
    %c0_i32 = arith.constant 0 : i32
    %c0_i32_0 = arith.constant 0 : i32
    %c0_i32_1 = arith.constant 0 : i32
    %c0_i32_2 = arith.constant 0 : i32
    %c0_i32_3 = arith.constant 0 : i32
    return %c0_i32, %c0_i32_0, %c0_i32_1, %c0_i32_2 : i32, i32, i32, i32
  }
  func.func @transform_5(%arg0: i32) -> (i32, i32, i32) {
    %c0_i32 = arith.constant 0 : i32
    %c0_i32_0 = arith.constant 0 : i32
    %c0_i32_1 = arith.constant 0 : i32
    %c0_i32_2 = arith.constant 0 : i32
    return %c0_i32, %c0_i32_0, %c0_i32_1 : i32, i32, i32
  }
  func.func @transform_6(%arg0: i32) -> (i32, i32) {
    %c0_i32 = arith.constant 0 : i32
    %c0_i32_0 = arith.constant 0 : i32
    %c0_i32_1 = arith.constant 0 : i32
    return %c0_i32, %c0_i32_0 : i32, i32
  }
}

</mosaic_0001>

<bundles_post_ra>
// kernel: se3_transformer_vector_forward.1
= control target key start
LH: loop header
LB: loop body
LE: loop exit
PB: predicated region body
PF: predicated region fallthrough
CT: control target
= control target key end

     0   :  { %v1106_v0 = vmov 1   ;;  %v1107_v1 = vmov 0   ;;  %v1108_v4 = vmov 2   ;;  %v38_v7 = vlaneseq  ;;  %s1468_s1 = inlined_call_operand.vmem [shape: f32[16,3], index: 1, kind: input, shape index: {}]   ;;  %s1469_s0 = inlined_call_operand.vmem [shape: f32[16,1], index: 0, kind: input, shape index: {}]   ;;  %s1470_s2 = inlined_call_operand.vmem [shape: f32[2,2,4,4], index: 2, kind: input, shape index: {}]   ;;  %s1471_s4 = inlined_call_operand.vmem [shape: f32[2,2,3,4], index: 4, kind: input, shape index: {}]   ;;  %s1472_s3 = inlined_call_operand.vmem [shape: f32[2,2,4,4], index: 3, kind: input, shape index: {}]   ;;  %s1473_s5 = inlined_call_operand.vmem [shape: f32[2,4,2], index: 5, kind: input, shape index: {}]   ;;  %s1474_s6 = inlined_call_operand.vmem [shape: f32[8,2], index: 6, kind: output, shape index: {}]  }
   0x1   :  { %1022 = vset.pattern.permute.xlu1 %v1106_v0  ;;  %1021 = vset.pattern.permute.xlu0 %v1107_v1  ;;  %v25_v2 = vld [vmem:[%s1468_s1] sm:$0xff]  ;;  %v26_v3 = vld [vmem:[%s1468_s1 + $0x8] sm:$0xff]  ;;  %vm95_vm0 = vcmask 31744   ;;  %vm855_vm1 = vcmask 1040384   ;;  %vm906_vm2 = vcmask 1041408   ;;  %vm908_vm3 = vcmask 1042432  }
   0x2   :  { %63 = vperm.xlu1 %1022, %v25_v2   ;;  %48 = vperm.xlu0 %1021, %v25_v2   ;;  %v24_v5 = vld [vmem:[%s1469_s0 + $0x8] sm:$0xff]  ;;  %v23_v6 = vld [vmem:[%s1469_s0] sm:$0xff]  ;;  %v1163_v8 = vshrl.u32 %v38_v7, 7  ;;  %vm910_vm4 = vcmask 1043456   ;;  %vm912_vm5 = vcmask 1044480   ;;  %vm1001_vm6 = vcmask 15360  }
   0x3   :  { %v1007_v10 = vld [vmem:[%s1470_s2 + $0x4] sm:$0xf]  ;;  %v27_v24 = vld [vmem:[%s1470_s2] sm:$0xf] }
   0x4   :  { %v1166_v9 = vsub.s32 0, %v1163_v8 }
   0x6   :  { %67 = vperm.xlu1 %1022, %v26_v3   ;;  %53 = vperm.xlu0 %1021, %v26_v3   ;;  %v59_v11 = vrot.slane %v1007_v10, %v1166_v9  ;;  %v41_v29 = vrot.slane %v27_v24, %v1166_v9 }
   0xa   :  { %1024 = vset.pattern.permute.xlu1 %v1108_v4  ;;  %1023 = vset.pattern.permute.xlu0 %v1108_v4 }
   0xb   :  { %77 = vperm.xlu1 %1024, %v26_v3   ;;  %73 = vperm.xlu0 %1023, %v25_v2  }
   0xf   :  { %1025 = vset.pattern.permute.xlu1 %v1107_v1  ;;  %1026 = vset.pattern.permute.xlu0 %v1107_v1 }
  0x10   :  { %35 = vperm.xlu0 %1026, %v24_v5   ;;  %30 = vperm.xlu1 %1025, %v23_v6  }
  0x81   :  { %v64_v12 = vpop.permute.xlu1 %63  ;;  %v49_v13 = vpop.permute.xlu0 %48 }
  0x82   :  { %v1172_v14 = vmul.f32 %v64_v12, %v59_v11  ;;  %v1174_v15 = vmul.f32 %v59_v11, %v49_v13 }
  0x84   :  { %v212_v20 = vmul.f32 %v1172_v14, %v1172_v14  ;;  %v210_v21 = vmul.f32 %v1174_v15, %v1174_v15 }
  0x85   :  { %v68_v16 = vpop.permute.xlu1 %67  ;;  %v54_v17 = vpop.permute.xlu0 %53 }
  0x86   :  { %v1176_v18 = vmul.f32 %v68_v16, %v59_v11  ;;  %v1178_v19 = vmul.f32 %v59_v11, %v54_v17  ;;  %v214_v30 = vadd.f32 %v212_v20, %v210_v21 }
  0x88   :  { %v213_v22 = vmul.f32 %v1176_v18, %v1176_v18  ;;  %v211_v23 = vmul.f32 %v1178_v19, %v1178_v19 }
  0x8a   :  { %v78_v25 = vpop.permute.xlu1 %77  ;;  %v74_v26 = vpop.permute.xlu0 %73  ;;  %v215_v31 = vadd.f32 %v213_v22, %v211_v23 }
  0x8b   :  { %v1191_v27 = vmul.f32 %v78_v25, %v59_v11  ;;  %v1193_v28 = vmul.f32 %v74_v26, %v59_v11 }
  0x8d   :  { %v217_v32 = vmul.f32 %v1191_v27, %v1191_v27  ;;  %v216_v33 = vmul.f32 %v1193_v28, %v1193_v28 }
  0x8f   :  { %v36_v34 = vpop.permute.xlu0 %35  ;;  %v31_v35 = vpop.permute.xlu1 %30  ;;  %v219_v36 = vadd.f32 %v217_v32, %v215_v31  ;;  %v218_v37 = vadd.f32 %v216_v33, %v214_v30 }
  0x90   :  { %v43_v38 = vmul.f32 %v41_v29, %v36_v34  ;;  %v42_v39 = vmul.f32 %v41_v29, %v31_v35 }
  0x91   :  { %v221_v40 = vadd.f32 1e-24, %v219_v36  ;;  %v220_v41 = vadd.f32 1e-24, %v218_v37 }
  0x92   :  { %v86_v42 = vmul.f32 %v43_v38, %v43_v38  ;;  %v85_v43 = vmul.f32 %v42_v39, %v42_v39 }
  0x93   :  { %1074 = vrsqrt.f32 %v221_v40  ;;  %v1224_v40 = vsub.s32 1, %v1163_v8 }
  0x94   :  { %v88_v44 = vadd.f32 1e-24, %v86_v42  ;;  %v87_v45 = vadd.f32 1e-24, %v85_v43  ;;  %1076 = vrsqrt.f32 %v220_v41 }
  0x96   :  { %1078 = vrsqrt.f32 %v88_v44 }
  0x97   :  { %1080 = vrsqrt.f32 %v87_v45 }
  0x9d   :  { %v1200_v46 = vpop.eup %1074 }
  0x9e   :  { %v1202_v47 = vpop.eup %1076  ;;  %v225_v48 = vmul.f32 %v1200_v46, %v219_v36 }
  0x9f   :  { %v224_v49 = vmul.f32 %v1202_v47, %v218_v37 }
  0xa0   :  { %v1079_v50 = vpop.eup %1078  ;;  %v229_v51 = vsel %vm95_vm0, %v225_v48, 0.0 }
  0xa1   :  { %v1081_v52 = vpop.eup %1080  ;;  %v1207_v53 = vmul.f32 %v1079_v50, %v43_v38  ;;  %230 = vadd.xlane.f32.xlu0 %v229_v51  ;;  %v226_v54 = vsel %vm95_vm0, %v224_v49, 0.0  ;;  %v92_v55 = vmul.f32 %v1079_v50, %v86_v42 }
  0xa2   :  { %v1210_v56 = vmul.f32 %v1081_v52, %v42_v39  ;;  %227 = vadd.xlane.f32.xlu1 %v226_v54  ;;  %v91_v57 = vmul.f32 %v1081_v52, %v85_v43  ;;  %v1221_v39 = vld [vmem:[%s1471_s4 + $0x4] sm:$0x7] }
  0xa3   :  { %v99_v58 = vsel %vm95_vm0, %v92_v55, 0.0  ;;  %v255_v41 = vrot.slane %v1221_v39, %v1166_v9  ;;  %v261_v45 = vrot.slane %v1221_v39, %v1224_v40 }
  0xa4   :  { %v96_v59 = vsel %vm95_vm0, %v91_v57, 0.0 }
  0xa5   :  { %100 = vadd.xlane.f32.xlu0 %v99_v58 }
  0xa6   :  { %97 = vadd.xlane.f32.xlu1 %v96_v59 }
 0x12e   :  { %v231_v60 = vpop.xlane.xlu0 %230 }
 0x12f   :  { %v233_v61 = vmul.f32 0.25, %v231_v60  ;;  %v228_v62 = vpop.xlane.xlu1 %227 }
 0x130   :  { %v232_v63 = vmul.f32 0.25, %v228_v62 }
 0x131   :  { %v235_v2 = vsub.f32 %v225_v48, %v233_v61  ;;  %v1233_v48 = vld [vmem:[%s1471_s4] sm:$0x7] }
 0x132   :  { %v234_v3 = vsub.f32 %v224_v49, %v232_v63  ;;  %v101_v5 = vpop.xlane.xlu0 %100  ;;  %v126_v52 = vrot.slane %v1233_v48, %v1166_v9  ;;  %v132_v60 = vrot.slane %v1233_v48, %v1224_v40 }
 0x133   :  { %v104_v6 = vmul.f32 0.25, %v101_v5  ;;  %v98_v7 = vpop.xlane.xlu1 %97  ;;  %v237_v10 = vmul.f32 %v235_v2, %v235_v2 }
 0x134   :  { %v103_v11 = vmul.f32 0.25, %v98_v7  ;;  %v236_v12 = vmul.f32 %v234_v3, %v234_v3 }
 0x135   :  { %v106_v13 = vsub.f32 %v92_v55, %v104_v6  ;;  %v241_v16 = vsel %vm95_vm0, %v237_v10, 0.0 }
 0x136   :  { %v105_v17 = vsub.f32 %v91_v57, %v103_v11  ;;  %242 = vadd.xlane.f32.xlu0 %v241_v16  ;;  %v238_v20 = vsel %vm95_vm0, %v236_v12, 0.0  ;;  %v1109_v11 = vmov 3  }
 0x137   :  { %239 = vadd.xlane.f32.xlu1 %v238_v20  ;;  %v108_v21 = vmul.f32 %v106_v13, %v106_v13 }
 0x138   :  { %v107_v22 = vmul.f32 %v105_v17, %v105_v17 }
 0x139   :  { %v112_v23 = vsel %vm95_vm0, %v108_v21, 0.0 }
 0x13a   :  { %113 = vadd.xlane.f32.xlu0 %v112_v23  ;;  %v109_v24 = vsel %vm95_vm0, %v107_v22, 0.0 }
 0x13b   :  { %110 = vadd.xlane.f32.xlu1 %v109_v24  ;;  %v1009_v24 = vld [vmem:[%s1472_s3 + $0x4] sm:$0xf] }
 0x1c3   :  { %v243_v25 = vpop.xlane.xlu0 %242 }
 0x1c4   :  { %v245_v26 = vmul.f32 0.25, %v243_v25  ;;  %v240_v29 = vpop.xlane.xlu1 %239  ;;  %v295_v25 = vrot.slane %v1009_v24, %v1224_v40 }
 0x1c5   :  { %v244_v30 = vmul.f32 0.25, %v240_v29 }
 0x1c6   :  { %v247_v31 = vadd.f32 1e-05, %v245_v26 }
 0x1c7   :  { %v246_v32 = vadd.f32 1e-05, %v244_v30  ;;  %v114_v33 = vpop.xlane.xlu0 %113  ;;  %v1256_v30 = vsub.s32 2, %v1163_v8 }
 0x1c8   :  { %1082 = vrsqrt.f32 %v247_v31  ;;  %v116_v34 = vmul.f32 0.25, %v114_v33  ;;  %v111_v35 = vpop.xlane.xlu1 %110  ;;  %v281_v31 = vrot.slane %v1009_v24, %v1166_v9  ;;  %v1263_v33 = vsub.s32 3, %v1163_v8 }
 0x1c9   :  { %1084 = vrsqrt.f32 %v246_v32  ;;  %v115_v36 = vmul.f32 0.25, %v111_v35  ;;  %v137_v32 = vld [vmem:[%s1472_s3] sm:$0xf] }
 0x1ca   :  { %v118_v37 = vadd.f32 1e-05, %v116_v34 }
 0x1cb   :  { %v117_v38 = vadd.f32 1e-05, %v115_v36  ;;  %v311_v36 = vrot.slane %v1009_v24, %v1256_v30 }
 0x1cc   :  { %1086 = vrsqrt.f32 %v118_v37 }
 0x1cd   :  { %1088 = vrsqrt.f32 %v117_v38  ;;  %v165_v38 = vrot.slane %v137_v32, %v1224_v40 }
 0x1d2   :  { %v1083_v42 = vpop.eup %1082 }
 0x1d3   :  { %v1085_v43 = vpop.eup %1084  ;;  %v251_v44 = vmul.f32 %v1083_v42, %v235_v2 }
 0x1d4   :  { %v250_v49 = vmul.f32 %v1085_v43, %v234_v3  ;;  %v327_v43 = vrot.slane %v1009_v24, %v1263_v33 }
 0x1d5   :  { %v257_v50 = vmul.f32 %v255_v41, %v251_v44 }
 0x1d6   :  { %v1087_v51 = vpop.eup %1086  ;;  %v256_v54 = vmul.f32 %v255_v41, %v250_v49  ;;  %v151_v41 = vrot.slane %v137_v32, %v1166_v9 }
 0x1d7   :  { %v1089_v55 = vpop.eup %1088  ;;  %v263_v57 = vadd.f32 %v261_v45, %v257_v50  ;;  %v122_v58 = vmul.f32 %v1087_v51, %v106_v13  ;;  %v181_v50 = vrot.slane %v137_v32, %v1256_v30 }
 0x1d8   :  { %v121_v59 = vmul.f32 %v1089_v55, %v105_v17  ;;  %v262_v63 = vadd.f32 %v261_v45, %v256_v54 }
 0x1d9   :  { %v265_v61 = vmax.f32 %v263_v57, 0.0  ;;  %v128_v2 = vmul.f32 %v126_v52, %v122_v58  ;;  %v197_v58 = vrot.slane %v137_v32, %v1263_v33 }
 0x1da   :  { %v127_v62 = vmul.f32 %v126_v52, %v121_v59  ;;  %v264_v6 = vmax.f32 %v262_v63, 0.0 }
 0x1db   :  { %275 = vperm.xlu0 %1026, %v265_v61   ;;  %v134_v7 = vadd.f32 %v132_v60, %v128_v2 }
 0x1dc   :  { %v133_v5 = vadd.f32 %v132_v60, %v127_v62 }
 0x1dd   :  { %v136_v10 = vmax.f32 %v134_v7, 0.0  ;;  %v335_v7 = vrot.slane %v1221_v39, %v1256_v30 }
 0x1de   :  { %v135_v3 = vmax.f32 %v133_v5, 0.0 }
 0x1df   :  { %1028 = vset.pattern.permute.xlu0 %v1108_v4 }
 0x1e0   :  { %140 = vperm.xlu1 %1025, %v135_v3   ;;  %301 = vperm.xlu0 %1028, %v264_v6  }
 0x1e4   :  { %145 = vperm.xlu1 %1025, %v136_v10   ;;  %1031 = vset.pattern.permute.xlu0 %v1109_v11 }
 0x1e5   :  { %321 = vperm.xlu0 %1031, %v265_v61  }
 0x1e8   :  { %270 = vperm.xlu1 %1025, %v264_v6  }
 0x1e9   :  { %1032 = vset.pattern.permute.xlu0 %v1106_v0 }
 0x1ea   :  { %155 = vperm.xlu0 %1032, %v135_v3  }
 0x1ec   :  { %1027 = vset.pattern.permute.xlu1 %v1106_v0 }
 0x1ed   :  { %285 = vperm.xlu1 %1027, %v264_v6  }
 0x1ee   :  { %1035 = vset.pattern.permute.xlu0 %v1108_v4 }
 0x1ef   :  { %175 = vperm.xlu0 %1035, %v136_v10  }
 0x1f1   :  { %289 = vperm.xlu1 %1027, %v265_v61  }
 0x1f3   :  { %1037 = vset.pattern.permute.xlu0 %v1107_v1 }
 0x1f5   :  { %1029 = vset.pattern.permute.xlu1 %v1108_v4 }
 0x1f6   :  { %305 = vperm.xlu1 %1029, %v265_v61  }
 0x1fa   :  { %1030 = vset.pattern.permute.xlu1 %v1109_v11 }
 0x1fb   :  { %317 = vperm.xlu1 %1030, %v264_v6  }
 0x1ff   :  { %1033 = vset.pattern.permute.xlu1 %v1106_v0 }
 0x200   :  { %159 = vperm.xlu1 %1033, %v136_v10  }
 0x204   :  { %1034 = vset.pattern.permute.xlu1 %v1108_v4 }
 0x205   :  { %171 = vperm.xlu1 %1034, %v135_v3  }
 0x209   :  { %1036 = vset.pattern.permute.xlu1 %v1109_v11 }
 0x20a   :  { %187 = vperm.xlu1 %1036, %v135_v3  }
 0x20e   :  { %191 = vperm.xlu1 %1036, %v136_v10   ;;  %v205_v10 = vrot.slane %v1233_v48, %v1256_v30 }
 0x212   :  { %1038 = vset.pattern.permute.xlu1 %v1107_v1 }
 0x25a   :  { %v276_v20 = vpop.permute.xlu0 %275 }
 0x25b   :  { %v283_v49 = vmul.f32 %v281_v31, %v276_v20 }
 0x25f   :  { %v141_v12 = vpop.permute.xlu1 %140  ;;  %v302_v22 = vpop.permute.xlu0 %301 }
 0x260   :  { %v312_v51 = vmul.f32 %v311_v36, %v302_v22  ;;  %v152_v57 = vmul.f32 %v151_v41, %v141_v12 }
 0x263   :  { %v146_v13 = vpop.permute.xlu1 %145 }
 0x264   :  { %v322_v29 = vpop.permute.xlu0 %321  ;;  %v153_v63 = vmul.f32 %v151_v41, %v146_v13 }
 0x267   :  { %v271_v16 = vpop.permute.xlu1 %270 }
 0x268   :  { %v282_v37 = vmul.f32 %v281_v31, %v271_v16 }
 0x269   :  { %v156_v42 = vpop.permute.xlu0 %155 }
 0x26a   :  { %v166_v8 = vmul.f32 %v165_v38, %v156_v42 }
 0x26c   :  { %v286_v17 = vpop.permute.xlu1 %285  ;;  %v168_v2 = vadd.f32 %v166_v8, %v152_v57 }
 0x26d   :  { %v296_v34 = vmul.f32 %v295_v25, %v286_v17  ;;  %v329_v17 = vmul.f32 %v327_v43, %v322_v29 }
 0x26e   :  { %v176_v6 = vpop.permute.xlu0 %175 }
 0x26f   :  { %v298_v44 = vadd.f32 %v296_v34, %v282_v37  ;;  %v183_v22 = vmul.f32 %v181_v50, %v176_v6 }
 0x270   :  { %v290_v21 = vpop.permute.xlu1 %289 }
 0x271   :  { %v297_v45 = vmul.f32 %v295_v25, %v290_v21  ;;  %v314_v60 = vadd.f32 %v312_v51, %v298_v44 }
 0x273   :  { %v299_v59 = vadd.f32 %v297_v45, %v283_v49 }
 0x275   :  { %v306_v23 = vpop.permute.xlu1 %305 }
 0x276   :  { %v313_v52 = vmul.f32 %v311_v36, %v306_v23 }
 0x278   :  { %v315_v5 = vadd.f32 %v313_v52, %v299_v59 }
 0x27a   :  { %v318_v26 = vpop.permute.xlu1 %317  ;;  %v331_v23 = vadd.f32 %v329_v17, %v315_v5 }
 0x27b   :  { %v328_v54 = vmul.f32 %v327_v43, %v318_v26 }
 0x27c   :  { %v337_v34 = vadd.f32 %v335_v7, %v331_v23 }
 0x27d   :  { %v330_v3 = vadd.f32 %v328_v54, %v314_v60  ;;  %v1011_v60 = vld [vmem:[%s1470_s2 + $0xc] sm:$0xf] }
 0x27e   :  { %v339_v29 = vmul.f32 %v1200_v46, %v337_v34  ;;  %v521_v5 = vrot.slane %v1011_v60, %v1256_v30 }
 0x27f   :  { %v160_v35 = vpop.permute.xlu1 %159  ;;  %v336_v24 = vadd.f32 %v335_v7, %v330_v3 }
 0x280   :  { %v167_v61 = vmul.f32 %v165_v38, %v160_v35  ;;  %v343_v41 = vmul.f32 %v339_v29, %v1176_v18  ;;  %v345_v18 = vmul.f32 %v339_v29, %v1191_v27 }
 0x281   :  { %v338_v35 = vmul.f32 %v1202_v47, %v336_v24  ;;  %v341_v47 = vmul.f32 %v339_v29, %v1178_v19 }
 0x282   :  { %v169_v12 = vadd.f32 %v167_v61, %v153_v63  ;;  %v481_v61 = vrot.slane %v1011_v60, %v1224_v40 }
 0x283   :  { %v340_v38 = vmul.f32 %v338_v35, %v1174_v15  ;;  %v344_v46 = vmul.f32 %v338_v35, %v1193_v28  ;;  %v342_v15 = vmul.f32 %v338_v35, %v1172_v14 }
 0x284   :  { %v172_v55 = vpop.permute.xlu1 %171  ;;  %v185_v31 = vadd.f32 %v183_v22, %v169_v12 }
 0x285   :  { %v182_v62 = vmul.f32 %v181_v50, %v172_v55 }
 0x287   :  { %v184_v20 = vadd.f32 %v182_v62, %v168_v2  ;;  %v447_v62 = vrot.slane %v1011_v60, %v1166_v9 }
 0x289   :  { %v188_v16 = vpop.permute.xlu1 %187 }
 0x28a   :  { %v198_v21 = vmul.f32 %v197_v58, %v188_v16  ;;  %v561_v16 = vrot.slane %v1011_v60, %v1263_v33 }
 0x28c   :  { %v200_v25 = vadd.f32 %v198_v21, %v184_v20 }
 0x28d   :  { %v192_v13 = vpop.permute.xlu1 %191 }
 0x28e   :  { %v206_v26 = vadd.f32 %v205_v10, %v200_v25  ;;  %v199_v32 = vmul.f32 %v197_v58, %v192_v13 }
 0x290   :  { %v208_v39 = vmul.f32 %v206_v26, %v1210_v56  ;;  %v201_v36 = vadd.f32 %v199_v32, %v185_v31 }
 0x292   :  { %v207_v48 = vadd.f32 %v205_v10, %v201_v36  ;;  %350 = vperm.xlu0 %1037, %v208_v39  }
 0x294   :  { %v209_v37 = vmul.f32 %v207_v48, %v1207_v53 }
 0x296   :  { %416 = vperm.xlu0 %1037, %v340_v38   ;;  %355 = vperm.xlu1 %1038, %v209_v37  }
 0x29a   :  { %431 = vperm.xlu0 %1037, %v343_v41   ;;  %1039 = vset.pattern.permute.xlu1 %v1106_v0 }
 0x29b   :  { %365 = vperm.xlu1 %1039, %v208_v39  }
 0x29e   :  { %1042 = vset.pattern.permute.xlu0 %v1106_v0 }
 0x29f   :  { %459 = vperm.xlu0 %1042, %v341_v47   ;;  %1040 = vset.pattern.permute.xlu1 %v1107_v1 }
 0x2a0   :  { %421 = vperm.xlu1 %1040, %v341_v47  }
 0x2a3   :  { %1043 = vset.pattern.permute.xlu0 %v1107_v1 }
 0x2a4   :  { %436 = vperm.xlu0 %1043, %v344_v46   ;;  %426 = vperm.xlu1 %1040, %v342_v15  }
 0x2a8   :  { %1046 = vset.pattern.permute.xlu0 %v1106_v0  ;;  %1041 = vset.pattern.permute.xlu1 %v1106_v0 }
 0x2a9   :  { %475 = vperm.xlu0 %1046, %v345_v18   ;;  %455 = vperm.xlu1 %1041, %v340_v38  }
 0x2ad   :  { %1048 = vset.pattern.permute.xlu0 %v1108_v4  ;;  %463 = vperm.xlu1 %1041, %v342_v15  }
 0x2ae   :  { %503 = vperm.xlu0 %1048, %v342_v15  }
 0x2b1   :  { %467 = vperm.xlu1 %1041, %v343_v41  }
 0x2b2   :  { %515 = vperm.xlu0 %1048, %v345_v18  }
 0x2b5   :  { %1044 = vset.pattern.permute.xlu1 %v1107_v1 }
 0x2b6   :  { %1050 = vset.pattern.permute.xlu0 %v1109_v11  ;;  %441 = vperm.xlu1 %1044, %v345_v18  }
 0x2b7   :  { %539 = vperm.xlu0 %1050, %v341_v47  }
 0x2ba   :  { %1045 = vset.pattern.permute.xlu1 %v1106_v0 }
 0x2bb   :  { %551 = vperm.xlu0 %1050, %v344_v46   ;;  %471 = vperm.xlu1 %1045, %v344_v46  }
 0x2bf   :  { %1051 = vset.pattern.permute.xlu0 %v1106_v0  ;;  %1047 = vset.pattern.permute.xlu1 %v1108_v4 }
 0x2c0   :  { %369 = vperm.xlu0 %1051, %v209_v37   ;;  %495 = vperm.xlu1 %1047, %v340_v38  }
 0x2c4   :  { %1053 = vset.pattern.permute.xlu0 %v1109_v11  ;;  %499 = vperm.xlu1 %1047, %v341_v47  }
 0x2c5   :  { %397 = vperm.xlu0 %1053, %v208_v39  }
 0x2c8   :  { %507 = vperm.xlu1 %1047, %v343_v41  }
 0x2c9   :  { %1055 = vset.pattern.permute.xlu0 %v1107_v1 }
 0x2cc   :  { %511 = vperm.xlu1 %1047, %v344_v46  }
 0x2d0   :  { %1049 = vset.pattern.permute.xlu1 %v1109_v11 }
 0x2d1   :  { %535 = vperm.xlu1 %1049, %v340_v38  }
 0x2d5   :  { %543 = vperm.xlu1 %1049, %v342_v15  }
 0x2d9   :  { %547 = vperm.xlu1 %1049, %v343_v41  }
 0x2dd   :  { %555 = vperm.xlu1 %1049, %v345_v18  }
 0x2e1   :  { %1052 = vset.pattern.permute.xlu1 %v1108_v4 }
 0x2e2   :  { %381 = vperm.xlu1 %1052, %v208_v39  }
 0x2e6   :  { %385 = vperm.xlu1 %1052, %v209_v37  }
 0x2ea   :  { %1054 = vset.pattern.permute.xlu1 %v1109_v11 }
 0x2eb   :  { %401 = vperm.xlu1 %1054, %v209_v37  }
 0x2ef   :  { %1056 = vset.pattern.permute.xlu1 %v1106_v0 }
 0x311   :  { %v1307_v27 = vpop.permute.xlu0 %350 }
 0x315   :  { %v1303_v14 = vpop.permute.xlu1 %355  ;;  %v417_v53 = vpop.permute.xlu0 %416 }
 0x316   :  { %v448_v17 = vmul.f32 %v447_v62, %v417_v53 }
 0x319   :  { %v432_v42 = vpop.permute.xlu0 %431 }
 0x31a   :  { %v1305_v19 = vpop.permute.xlu1 %365  ;;  %v451_v29 = vmul.f32 %v447_v62, %v432_v42  ;;  %v1010_v42 = vld [vmem:[%s1470_s2 + $0x8] sm:$0xf] }
 0x31e   :  { %v460_v45 = vpop.permute.xlu0 %459 }
 0x31f   :  { %v422_v28 = vpop.permute.xlu1 %421  ;;  %v483_v22 = vmul.f32 %v481_v61, %v460_v45 }
 0x320   :  { %v449_v23 = vmul.f32 %v447_v62, %v422_v28 }
 0x322   :  { %v489_v37 = vadd.f32 %v483_v22, %v449_v23 }
 0x323   :  { %v427_v56 = vpop.permute.xlu1 %426  ;;  %v437_v50 = vpop.permute.xlu0 %436 }
 0x324   :  { %v450_v10 = vmul.f32 %v447_v62, %v427_v56  ;;  %v452_v12 = vmul.f32 %v447_v62, %v437_v50 }
 0x328   :  { %v456_v43 = vpop.permute.xlu1 %455  ;;  %v476_v8 = vpop.permute.xlu0 %475 }
 0x329   :  { %v482_v6 = vmul.f32 %v481_v61, %v456_v43  ;;  %v487_v53 = vmul.f32 %v481_v61, %v476_v8 }
 0x32b   :  { %v488_v26 = vadd.f32 %v482_v6, %v448_v17 }
 0x32c   :  { %v464_v44 = vpop.permute.xlu1 %463 }
 0x32d   :  { %v504_v55 = vpop.permute.xlu0 %503  ;;  %v484_v2 = vmul.f32 %v481_v61, %v464_v44 }
 0x32e   :  { %v524_v25 = vmul.f32 %v521_v5, %v504_v55 }
 0x32f   :  { %v490_v24 = vadd.f32 %v484_v2, %v450_v10 }
 0x330   :  { %v468_v49 = vpop.permute.xlu1 %467 }
 0x331   :  { %v516_v58 = vpop.permute.xlu0 %515  ;;  %v485_v35 = vmul.f32 %v481_v61, %v468_v49  ;;  %v530_v38 = vadd.f32 %v524_v25, %v490_v24  ;;  %v407_v24 = vrot.slane %v1010_v42, %v1263_v33 }
 0x333   :  { %v491_v56 = vadd.f32 %v485_v35, %v451_v29 }
 0x335   :  { %v442_v51 = vpop.permute.xlu1 %441 }
 0x336   :  { %v540_v3 = vpop.permute.xlu0 %539  ;;  %v453_v41 = vmul.f32 %v447_v62, %v442_v51 }
 0x337   :  { %v563_v50 = vmul.f32 %v561_v16, %v540_v3  ;;  %v361_v3 = vrot.slane %v1010_v42, %v1166_v9 }
 0x338   :  { %v493_v49 = vadd.f32 %v487_v53, %v453_v41 }
 0x339   :  { %v362_v23 = vmul.f32 %v361_v3, %v1307_v27  ;;  %v363_v27 = vmul.f32 %v361_v3, %v1303_v14 }
 0x33a   :  { %v472_v52 = vpop.permute.xlu1 %471  ;;  %v552_v34 = vpop.permute.xlu0 %551 }
 0x33b   :  { %v486_v7 = vmul.f32 %v481_v61, %v472_v52  ;;  %v566_v46 = vmul.f32 %v561_v16, %v552_v34 }
 0x33d   :  { %v492_v31 = vadd.f32 %v486_v7, %v452_v12 }
 0x33f   :  { %v496_v54 = vpop.permute.xlu1 %495  ;;  %v370_v60 = vpop.permute.xlu0 %369 }
 0x340   :  { %v522_v20 = vmul.f32 %v521_v5, %v496_v54 }
 0x342   :  { %v528_v39 = vadd.f32 %v522_v20, %v488_v26 }
 0x343   :  { %v500_v57 = vpop.permute.xlu1 %499 }
 0x344   :  { %v523_v36 = vmul.f32 %v521_v5, %v500_v57  ;;  %v375_v57 = vrot.slane %v1010_v42, %v1224_v40  ;;  %v398_v25 = vpop.permute.xlu0 %397 }
 0x345   :  { %v408_v34 = vmul.f32 %v407_v24, %v398_v25 }
 0x346   :  { %v529_v43 = vadd.f32 %v523_v36, %v489_v37 }
 0x347   :  { %v508_v59 = vpop.permute.xlu1 %507 }
 0x348   :  { %v525_v15 = vmul.f32 %v521_v5, %v508_v59  ;;  %v527_v59 = vmul.f32 %v521_v5, %v516_v58  ;;  %v1330_v61 = vadd.f32 %v563_v50, %v529_v43  ;;  %v376_v58 = vmul.f32 %v375_v57, %v1305_v19 }
 0x34a   :  { %v531_v51 = vadd.f32 %v525_v15, %v491_v56  ;;  %v533_v10 = vadd.f32 %v527_v59, %v493_v49  ;;  %v703_v20 = vmul.f32 %v1330_v61, %v1330_v61  ;;  %v378_v19 = vadd.f32 %v376_v58, %v362_v23 }
 0x34b   :  { %v512_v63 = vpop.permute.xlu1 %511 }
 0x34c   :  { %v526_v21 = vmul.f32 %v521_v5, %v512_v63  ;;  %v391_v5 = vrot.slane %v1010_v42, %v1256_v30 }
 0x34e   :  { %v532_v48 = vadd.f32 %v526_v21, %v492_v31 }
 0x350   :  { %v536_v13 = vpop.permute.xlu1 %535  ;;  %v1318_v44 = vadd.f32 %v566_v46, %v532_v48 }
 0x351   :  { %v562_v32 = vmul.f32 %v561_v16, %v536_v13 }
 0x352   :  { %v708_v2 = vmul.f32 %v1318_v44, %v1318_v44 }
 0x353   :  { %v1316_v18 = vadd.f32 %v562_v32, %v528_v39  ;;  %v377_v39 = vmul.f32 %v375_v57, %v370_v60 }
 0x354   :  { %v544_v47 = vpop.permute.xlu1 %543 }
 0x355   :  { %v564_v28 = vmul.f32 %v561_v16, %v544_v47  ;;  %v702_v54 = vmul.f32 %v1316_v18, %v1316_v18  ;;  %v379_v41 = vadd.f32 %v377_v39, %v363_v27 }
 0x357   :  { %v1320_v45 = vadd.f32 %v564_v28, %v530_v38 }
 0x358   :  { %v548_v52 = vpop.permute.xlu1 %547 }
 0x359   :  { %v704_v8 = vmul.f32 %v1320_v45, %v1320_v45  ;;  %v565_v55 = vmul.f32 %v561_v16, %v548_v52 }
 0x35b   :  { %v1332_v62 = vadd.f32 %v565_v55, %v531_v51  ;;  %v706_v63 = vadd.f32 %v704_v8, %v702_v54 }
 0x35c   :  { %v556_v6 = vpop.permute.xlu1 %555 }
 0x35d   :  { %v705_v7 = vmul.f32 %v1332_v62, %v1332_v62  ;;  %v567_v17 = vmul.f32 %v561_v16, %v556_v6  ;;  %v710_v12 = vadd.f32 %v708_v2, %v706_v63 }
 0x35f   :  { %v1343_v21 = vadd.f32 %v567_v17, %v533_v10  ;;  %v712_v22 = vadd.f32 1e-24, %v710_v12  ;;  %v707_v26 = vadd.f32 %v705_v7, %v703_v20 }
 0x361   :  { %v709_v13 = vmul.f32 %v1343_v21, %v1343_v21  ;;  %v382_v16 = vpop.permute.xlu1 %381  ;;  %1090 = vrsqrt.f32 %v712_v22 }
 0x362   :  { %v392_v31 = vmul.f32 %v391_v5, %v382_v16 }
 0x363   :  { %v711_v32 = vadd.f32 %v709_v13, %v707_v26 }
 0x364   :  { %v394_v35 = vadd.f32 %v392_v31, %v378_v19 }
 0x365   :  { %v386_v36 = vpop.permute.xlu1 %385  ;;  %v713_v48 = vadd.f32 1e-24, %v711_v32 }
 0x366   :  { %v410_v29 = vadd.f32 %v408_v34, %v394_v35  ;;  %v393_v37 = vmul.f32 %v391_v5, %v386_v36 }
 0x367   :  { %1092 = vrsqrt.f32 %v713_v48 }
 0x368   :  { %v578_v38 = vmul.f32 %v410_v29, %v410_v29  ;;  %v395_v28 = vadd.f32 %v393_v37, %v379_v41 }
 0x36a   :  { %v402_v47 = vpop.permute.xlu1 %401  ;;  %v580_v46 = vadd.f32 1e-24, %v578_v38 }
 0x36b   :  { %v1350_v15 = vpop.eup %1090  ;;  %v409_v53 = vmul.f32 %v407_v24, %v402_v47 }
 0x36c   :  { %v716_v56 = vmul.f32 %v1350_v15, %v710_v12  ;;  %1094 = vrsqrt.f32 %v580_v46 }
 0x36d   :  { %v411_v43 = vadd.f32 %v409_v53, %v395_v28  ;;  %v1371_v53 = vld [vmem:[%s1471_s4 + $0x8] sm:$0x7] }
 0x36e   :  { %v718_v49 = vsel %vm95_vm0, %v716_v56, 0.0 }
 0x36f   :  { %v579_v50 = vmul.f32 %v411_v43, %v411_v43  ;;  %719 = vadd.xlane.f32.xlu1 %v718_v49 }
 0x371   :  { %v1354_v52 = vpop.eup %1092  ;;  %v581_v14 = vadd.f32 1e-24, %v579_v50 }
 0x372   :  { %v717_v42 = vmul.f32 %v1354_v52, %v711_v32 }
 0x373   :  { %1096 = vrsqrt.f32 %v581_v14 }
 0x374   :  { %v721_v51 = vsel %vm95_vm0, %v717_v42, 0.0 }
 0x375   :  { %722 = vadd.xlane.f32.xlu0 %v721_v51 }
 0x376   :  { %v1095_v54 = vpop.eup %1094 }
 0x377   :  { %v584_v8 = vmul.f32 %v1095_v54, %v578_v38  ;;  %v1358_v55 = vmul.f32 %v1095_v54, %v410_v29 }
 0x379   :  { %v588_v57 = vsel %vm95_vm0, %v584_v8, 0.0 }
 0x37a   :  { %589 = vadd.xlane.f32.xlu0 %v588_v57 }
 0x37d   :  { %v1097_v59 = vpop.eup %1096 }
 0x37e   :  { %v1361_v60 = vmul.f32 %v1097_v59, %v411_v43  ;;  %v585_v63 = vmul.f32 %v1097_v59, %v579_v50  ;;  %v623_v50 = vrot.slane %v1371_v53, %v1224_v40 }
 0x380   :  { %v591_v2 = vsel %vm95_vm0, %v585_v63, 0.0 }
 0x381   :  { %592 = vadd.xlane.f32.xlu1 %v591_v2 }
 0x3fc   :  { %v720_v3 = vpop.xlane.xlu1 %719 }
 0x3fd   :  { %v724_v6 = vmul.f32 0.25, %v720_v3 }
 0x3ff   :  { %v726_v7 = vsub.f32 %v716_v56, %v724_v6  ;;  %v617_v56 = vrot.slane %v1371_v53, %v1166_v9 }
 0x401   :  { %v728_v10 = vmul.f32 %v726_v7, %v726_v7 }
 0x402   :  { %v723_v17 = vpop.xlane.xlu0 %722 }
 0x403   :  { %v725_v12 = vmul.f32 0.25, %v723_v17  ;;  %v730_v58 = vsel %vm95_vm0, %v728_v10, 0.0 }
 0x404   :  { %731 = vadd.xlane.f32.xlu0 %v730_v58 }
 0x405   :  { %v727_v5 = vsub.f32 %v717_v42, %v725_v12  ;;  %v1380_v42 = vld [vmem:[%s1471_s4 + $0xc] sm:$0x7] }
 0x406   :  { %v747_v57 = vrot.slane %v1380_v42, %v1166_v9  ;;  %v753_v10 = vrot.slane %v1380_v42, %v1224_v40 }
 0x407   :  { %v590_v20 = vpop.xlane.xlu0 %589  ;;  %v729_v22 = vmul.f32 %v727_v5, %v727_v5 }
 0x408   :  { %v594_v23 = vmul.f32 0.25, %v590_v20 }
 0x409   :  { %v733_v24 = vsel %vm95_vm0, %v729_v22, 0.0 }
 0x40a   :  { %v596_v25 = vsub.f32 %v584_v8, %v594_v23  ;;  %734 = vadd.xlane.f32.xlu1 %v733_v24 }
 0x40c   :  { %v598_v13 = vmul.f32 %v596_v25, %v596_v25 }
 0x40e   :  { %v593_v16 = vpop.xlane.xlu1 %592  ;;  %v600_v26 = vsel %vm95_vm0, %v598_v13, 0.0 }
 0x40f   :  { %v595_v19 = vmul.f32 0.25, %v593_v16  ;;  %601 = vadd.xlane.f32.xlu0 %v600_v26 }
 0x411   :  { %v597_v31 = vsub.f32 %v585_v63, %v595_v19 }
 0x413   :  { %v599_v32 = vmul.f32 %v597_v31, %v597_v31 }
 0x415   :  { %v603_v34 = vsel %vm95_vm0, %v599_v32, 0.0  ;;  %v1014_v32 = vld [vmem:[%s1472_s3 + $0x8] sm:$0xf] }
 0x416   :  { %604 = vadd.xlane.f32.xlu1 %v603_v34 }
 0x491   :  { %v732_v35 = vpop.xlane.xlu0 %731 }
 0x492   :  { %v736_v39 = vmul.f32 0.25, %v732_v35  ;;  %v643_v35 = vrot.slane %v1014_v32, %v1166_v9 }
 0x494   :  { %v738_v27 = vadd.f32 1e-05, %v736_v39  ;;  %v657_v39 = vrot.slane %v1014_v32, %v1224_v40 }
 0x497   :  { %v735_v36 = vpop.xlane.xlu1 %734 }
 0x498   :  { %v737_v37 = vmul.f32 0.25, %v735_v36 }
 0x49a   :  { %v739_v41 = vadd.f32 1e-05, %v737_v37  ;;  %v1404_v37 = vrot.slane %v1014_v32, %v1263_v33 }
 0x49c   :  { %v602_v48 = vpop.xlane.xlu0 %601 }
 0x49d   :  { %v606_v29 = vmul.f32 0.25, %v602_v48  ;;  %v673_v48 = vrot.slane %v1014_v32, %v1256_v30 }
 0x49f   :  { %v608_v38 = vadd.f32 1e-05, %v606_v29 }
 0x4a1   :  { %1098 = vrsqrt.f32 %v608_v38 }
 0x4a2   :  { %1100 = vrsqrt.f32 %v738_v27 }
 0x4a3   :  { %v605_v47 = vpop.xlane.xlu1 %604  ;;  %1102 = vrsqrt.f32 %v739_v41 }
 0x4a4   :  { %v607_v46 = vmul.f32 0.25, %v605_v47 }
 0x4a6   :  { %v609_v28 = vadd.f32 1e-05, %v607_v46 }
 0x4a8   :  { %1104 = vrsqrt.f32 %v609_v28 }
 0x4ab   :  { %v1099_v43 = vpop.eup %1098 }
 0x4ac   :  { %v612_v49 = vmul.f32 %v1099_v43, %v596_v25  ;;  %v1101_v14 = vpop.eup %1100 }
 0x4ad   :  { %v742_v8 = vmul.f32 %v1101_v14, %v726_v7  ;;  %v1103_v59 = vpop.eup %1102 }
 0x4ae   :  { %v618_v51 = vmul.f32 %v617_v56, %v612_v49  ;;  %v743_v17 = vmul.f32 %v1103_v59, %v727_v5 }
 0x4af   :  { %v748_v6 = vmul.f32 %v747_v57, %v742_v8 }
 0x4b0   :  { %v624_v54 = vadd.f32 %v623_v50, %v618_v51  ;;  %v749_v7 = vmul.f32 %v747_v57, %v743_v17  ;;  %v1414_v51 = vrot.slane %v1371_v53, %v1256_v30 }
 0x4b1   :  { %v754_v20 = vadd.f32 %v753_v10, %v748_v6 }
 0x4b2   :  { %v1105_v63 = vpop.eup %1104  ;;  %v626_v2 = vmax.f32 %v624_v54, 0.0  ;;  %v755_v24 = vadd.f32 %v753_v10, %v749_v7 }
 0x4b3   :  { %v613_v3 = vmul.f32 %v1105_v63, %v597_v31  ;;  %v756_v23 = vmax.f32 %v754_v20, 0.0 }
 0x4b4   :  { %632 = vperm.xlu0 %1055, %v626_v2   ;;  %647 = vperm.xlu1 %1056, %v626_v2   ;;  %v757_v25 = vmax.f32 %v755_v24, 0.0 }
 0x4b5   :  { %v619_v12 = vmul.f32 %v617_v56, %v613_v3  ;;  %v1015_v56 = vld [vmem:[%s1472_s3 + $0xc] sm:$0xf] }
 0x4b6   :  { %v787_v49 = vrot.slane %v1015_v56, %v1224_v40  ;;  %v773_v14 = vrot.slane %v1015_v56, %v1166_v9  ;;  %v803_v8 = vrot.slane %v1015_v56, %v1256_v30  ;;  %v819_v6 = vrot.slane %v1015_v56, %v1263_v33 }
 0x4b7   :  { %v625_v58 = vadd.f32 %v623_v50, %v619_v12 }
 0x4b8   :  { %1058 = vset.pattern.permute.xlu1 %v1108_v4 }
 0x4b9   :  { %663 = vperm.xlu1 %1058, %v626_v2   ;;  %v627_v22 = vmax.f32 %v625_v58, 0.0  ;;  %v827_v58 = vrot.slane %v1380_v42, %v1256_v30 }
 0x4bb   :  { %637 = vperm.xlu0 %1055, %v627_v22  }
 0x4bd   :  { %1059 = vset.pattern.permute.xlu1 %v1107_v1 }
 0x4be   :  { %762 = vperm.xlu1 %1059, %v756_v23  }
 0x4bf   :  { %1057 = vset.pattern.permute.xlu0 %v1106_v0 }
 0x4c0   :  { %651 = vperm.xlu0 %1057, %v627_v22  }
 0x4c2   :  { %767 = vperm.xlu1 %1059, %v757_v25  }
 0x4c4   :  { %1064 = vset.pattern.permute.xlu0 %v1109_v11 }
 0x4c5   :  { %679 = vperm.xlu0 %1064, %v626_v2  }
 0x4c6   :  { %1060 = vset.pattern.permute.xlu1 %v1106_v0 }
 0x4c7   :  { %777 = vperm.xlu1 %1060, %v756_v23  }
 0x4c9   :  { %1067 = vset.pattern.permute.xlu0 %v1106_v0 }
 0x4cb   :  { %781 = vperm.xlu1 %1060, %v757_v25  }
 0x4cf   :  { %1061 = vset.pattern.permute.xlu1 %v1108_v4 }
 0x4d0   :  { %793 = vperm.xlu1 %1061, %v756_v23  }
 0x4d4   :  { %797 = vperm.xlu1 %1061, %v757_v25  }
 0x4d8   :  { %1062 = vset.pattern.permute.xlu1 %v1109_v11 }
 0x4d9   :  { %809 = vperm.xlu1 %1062, %v756_v23  }
 0x4dd   :  { %813 = vperm.xlu1 %1062, %v757_v25  }
 0x4e1   :  { %1063 = vset.pattern.permute.xlu1 %v1108_v4 }
 0x4e2   :  { %667 = vperm.xlu1 %1063, %v627_v22  }
 0x4e6   :  { %1065 = vset.pattern.permute.xlu1 %v1109_v11 }
 0x4e7   :  { %683 = vperm.xlu1 %1065, %v627_v22  }
 0x4eb   :  { %1066 = vset.pattern.permute.xlu1 %v1107_v1 }
 0x533   :  { %v648_v5 = vpop.permute.xlu1 %647  ;;  %v633_v16 = vpop.permute.xlu0 %632 }
 0x534   :  { %v644_v29 = vmul.f32 %v643_v35, %v633_v16  ;;  %v658_v27 = vmul.f32 %v657_v39, %v648_v5 }
 0x536   :  { %v660_v46 = vadd.f32 %v658_v27, %v644_v29 }
 0x538   :  { %v664_v13 = vpop.permute.xlu1 %663 }
 0x539   :  { %v674_v47 = vmul.f32 %v673_v48, %v664_v13 }
 0x53a   :  { %v638_v19 = vpop.permute.xlu0 %637 }
 0x53b   :  { %v676_v43 = vadd.f32 %v674_v47, %v660_v46  ;;  %v645_v46 = vmul.f32 %v643_v35, %v638_v19 }
 0x53d   :  { %v763_v26 = vpop.permute.xlu1 %762 }
 0x53e   :  { %v774_v63 = vmul.f32 %v773_v14, %v763_v26 }
 0x53f   :  { %v652_v34 = vpop.permute.xlu0 %651 }
 0x540   :  { %v659_v29 = vmul.f32 %v657_v39, %v652_v34 }
 0x541   :  { %v768_v31 = vpop.permute.xlu1 %767 }
 0x542   :  { %v775_v12 = vmul.f32 %v773_v14, %v768_v31  ;;  %v661_v34 = vadd.f32 %v659_v29, %v645_v46 }
 0x544   :  { %v680_v38 = vpop.permute.xlu0 %679 }
 0x545   :  { %v690_v28 = vmul.f32 %v1404_v37, %v680_v38 }
 0x546   :  { %v778_v36 = vpop.permute.xlu1 %777 }
 0x547   :  { %v692_v54 = vadd.f32 %v690_v28, %v676_v43  ;;  %v788_v57 = vmul.f32 %v787_v49, %v778_v36 }
 0x549   :  { %v698_v2 = vadd.f32 %v1414_v51, %v692_v54  ;;  %v790_v10 = vadd.f32 %v788_v57, %v774_v63 }
 0x54a   :  { %v782_v41 = vpop.permute.xlu1 %781 }
 0x54b   :  { %v789_v17 = vmul.f32 %v787_v49, %v782_v41  ;;  %v700_v53 = vmul.f32 %v698_v2, %v1358_v55 }
 0x54d   :  { %v791_v24 = vadd.f32 %v789_v17, %v775_v12  ;;  %v838_v13 = vsel %vm95_vm0, %v700_v53, 0.0 }
 0x54e   :  { %v839_v27 = vrot.slane %v838_v13, 4 }
 0x54f   :  { %v794_v50 = vpop.permute.xlu1 %793 }
 0x550   :  { %v804_v3 = vmul.f32 %v803_v8, %v794_v50 }
 0x552   :  { %v806_v7 = vadd.f32 %v804_v3, %v790_v10 }
 0x553   :  { %v798_v59 = vpop.permute.xlu1 %797 }
 0x554   :  { %v805_v22 = vmul.f32 %v803_v8, %v798_v59 }
 0x556   :  { %v807_v16 = vadd.f32 %v805_v22, %v791_v24 }
 0x558   :  { %v810_v20 = vpop.permute.xlu1 %809 }
 0x559   :  { %v820_v23 = vmul.f32 %v819_v6, %v810_v20 }
 0x55b   :  { %v822_v25 = vadd.f32 %v820_v23, %v806_v7 }
 0x55c   :  { %v814_v5 = vpop.permute.xlu1 %813 }
 0x55d   :  { %v828_v26 = vadd.f32 %v827_v58, %v822_v25  ;;  %v821_v32 = vmul.f32 %v819_v6, %v814_v5 }
 0x55f   :  { %v830_v36 = vmul.f32 %v1350_v15, %v828_v26  ;;  %v823_v31 = vadd.f32 %v821_v32, %v807_v16 }
 0x561   :  { %v832_v42 = vmul.f32 %v830_v36, %v1316_v18  ;;  %v834_v55 = vmul.f32 %v830_v36, %v1320_v45  ;;  %v836_v38 = vmul.f32 %v830_v36, %v1318_v44  ;;  %v829_v41 = vadd.f32 %v827_v58, %v823_v31  ;;  %v668_v47 = vpop.permute.xlu1 %667 }
 0x562   :  { %v675_v28 = vmul.f32 %v673_v48, %v668_v47  ;;  %v840_v18 = vadd.f32 %v839_v27, %v838_v13 }
 0x563   :  { %v857_v56 = vsel %vm95_vm0, %v832_v42, 0.0  ;;  %v873_v43 = vsel %vm95_vm0, %v834_v55, 0.0  ;;  %v889_v49 = vsel %vm95_vm0, %v836_v38, 0.0  ;;  %v831_v15 = vmul.f32 %v1354_v52, %v829_v41 }
 0x564   :  { %v858_v39 = vrot.slane %v857_v56, 4  ;;  %v874_v50 = vrot.slane %v873_v43, 4  ;;  %v890_v48 = vrot.slane %v889_v49, 4  ;;  %v677_v54 = vadd.f32 %v675_v28, %v661_v34 }
 0x565   :  { %v833_v45 = vmul.f32 %v831_v15, %v1330_v61  ;;  %v835_v44 = vmul.f32 %v831_v15, %v1332_v62  ;;  %v837_v14 = vmul.f32 %v831_v15, %v1343_v21  ;;  %v841_v53 = vrot.slane %v840_v18, 2 }
 0x566   :  { %v859_v19 = vadd.f32 %v858_v39, %v857_v56  ;;  %v875_v35 = vadd.f32 %v874_v50, %v873_v43  ;;  %v684_v8 = vpop.permute.xlu1 %683  ;;  %v891_v21 = vadd.f32 %v890_v48, %v889_v49 }
 0x567   :  { %v865_v57 = vsel %vm95_vm0, %v833_v45, 0.0  ;;  %v881_v59 = vsel %vm95_vm0, %v835_v44, 0.0  ;;  %v897_v52 = vsel %vm95_vm0, %v837_v14, 0.0  ;;  %v691_v63 = vmul.f32 %v1404_v37, %v684_v8 }
 0x568   :  { %v860_v2 = vrot.slane %v859_v19, 2  ;;  %v876_v3 = vrot.slane %v875_v35, 2  ;;  %v866_v61 = vrot.slane %v865_v57, 4  ;;  %v882_v6 = vrot.slane %v881_v59, 4 }
 0x569   :  { %v898_v62 = vrot.slane %v897_v52, 4  ;;  %v693_v10 = vadd.f32 %v691_v63, %v677_v54  ;;  %v892_v13 = vrot.slane %v891_v21, 2  ;;  %v842_v36 = vadd.f32 %v841_v53, %v840_v18 }
 0x56a   :  { %v867_v17 = vadd.f32 %v866_v61, %v865_v57  ;;  %v883_v12 = vadd.f32 %v882_v6, %v881_v59  ;;  %v861_v58 = vadd.f32 %v860_v2, %v859_v19  ;;  %v877_v7 = vadd.f32 %v876_v3, %v875_v35 }
 0x56b   :  { %v699_v20 = vadd.f32 %v1414_v51, %v693_v10  ;;  %v899_v37 = vadd.f32 %v898_v62, %v897_v52  ;;  %v893_v38 = vadd.f32 %v892_v13, %v891_v21  ;;  %v914_v21 = vld [vmem:[%s1473_s5] sm:$0xf] }
 0x56c   :  { %v868_v22 = vrot.slane %v867_v17, 2  ;;  %v884_v23 = vrot.slane %v883_v12, 2  ;;  %v862_v25 = vrot.slane %v861_v58, 1  ;;  %v878_v29 = vrot.slane %v877_v7, 1 }
 0x56d   :  { %v701_v24 = vmul.f32 %v699_v20, %v1361_v60  ;;  %v900_v42 = vrot.slane %v899_v37, 2  ;;  %v843_v60 = vrot.slane %v842_v36, 1  ;;  %v894_v15 = vrot.slane %v893_v38, 1 }
 0x56e   :  { %v869_v5 = vadd.f32 %v868_v22, %v867_v17  ;;  %v885_v26 = vadd.f32 %v884_v23, %v883_v12  ;;  %v863_v27 = vadd.f32 %v862_v25, %v861_v58  ;;  %v879_v28 = vadd.f32 %v878_v29, %v877_v7 }
 0x56f   :  { %v847_v16 = vsel %vm95_vm0, %v701_v24, 0.0  ;;  %v901_v43 = vadd.f32 %v900_v42, %v899_v37  ;;  %v844_v50 = vadd.f32 %v843_v60, %v842_v36  ;;  %v895_v19 = vadd.f32 %v894_v15, %v893_v38 }
 0x570   :  { %v848_v32 = vrot.slane %v847_v16, 4  ;;  %v870_v31 = vrot.slane %v869_v5, 1  ;;  %v886_v41 = vrot.slane %v885_v26, 1  ;;  %v864_v56 = vmul.f32 0.125, %v863_v27 }
 0x571   :  { %v880_v45 = vmul.f32 0.125, %v879_v28  ;;  %v902_v44 = vrot.slane %v901_v43, 1  ;;  %v846_v54 = vmul.f32 0.125, %v844_v50  ;;  %v896_v63 = vmul.f32 0.125, %v895_v19 }
 0x572   :  { %v849_v51 = vadd.f32 %v848_v32, %v847_v16  ;;  %v871_v55 = vadd.f32 %v870_v31, %v869_v5  ;;  %v887_v39 = vadd.f32 %v886_v41, %v885_v26  ;;  %v942_v53 = vrot.slane %v914_v21, %v1256_v30 }
 0x573   :  { %v903_v57 = vadd.f32 %v902_v44, %v901_v43  ;;  %v952_v5 = vrot.slane %v914_v21, %v1263_v33 }
 0x574   :  { %v850_v47 = vrot.slane %v849_v51, 2  ;;  %v872_v46 = vmul.f32 0.125, %v871_v55  ;;  %v888_v48 = vmul.f32 0.125, %v887_v39 }
 0x575   :  { %v904_v3 = vmul.f32 0.125, %v903_v57 }
 0x576   :  { %v851_v49 = vadd.f32 %v850_v47, %v849_v51  ;;  %v905_v34 = vsel %vm855_vm1, %v864_v56, %v872_v46 }
 0x577   :  { %v907_v35 = vsel %vm906_vm2, %v905_v34, %v880_v45 }
 0x578   :  { %v852_v18 = vrot.slane %v851_v49, 1  ;;  %v909_v59 = vsel %vm908_vm3, %v907_v35, %v888_v48 }
 0x579   :  { %v911_v2 = vsel %vm910_vm4, %v909_v59, %v896_v63 }
 0x57a   :  { %v853_v14 = vadd.f32 %v852_v18, %v851_v49  ;;  %v913_v61 = vsel %vm912_vm5, %v911_v2, %v904_v3 }
 0x57c   :  { %v854_v8 = vmul.f32 0.125, %v853_v14 }
 0x57e   :  { %v856_v52 = vsel %vm855_vm1, %v846_v54, %v854_v8 }
 0x57f   :  { %926 = vperm.xlu0 %1067, %v856_v52   ;;  %917 = vperm.xlu1 %1066, %v856_v52  }
 0x583   :  { %1070 = vset.pattern.permute.xlu0 %v1107_v1  ;;  %1068 = vset.pattern.permute.xlu1 %v1108_v4 }
 0x584   :  { %959 = vperm.xlu0 %1070, %v913_v61   ;;  %936 = vperm.xlu1 %1068, %v856_v52  }
 0x588   :  { %1073 = vset.pattern.permute.xlu0 %v1109_v11  ;;  %1069 = vset.pattern.permute.xlu1 %v1109_v11  ;;  %v1016_v11 = vld [vmem:[%s1473_s5 + $0x4] sm:$0xf] }
 0x589   :  { %988 = vperm.xlu0 %1073, %v913_v61   ;;  %946 = vperm.xlu1 %1069, %v856_v52   ;;  %v974_v17 = vrot.slane %v1016_v11, %v1224_v40  ;;  %v965_v58 = vrot.slane %v1016_v11, %v1166_v9  ;;  %v984_v22 = vrot.slane %v1016_v11, %v1256_v30 }
 0x58a   :  { %v994_v23 = vrot.slane %v1016_v11, %v1263_v33 }
 0x58d   :  { %1071 = vset.pattern.permute.xlu1 %v1106_v0  ;;  %v932_v0 = vrot.slane %v914_v21, %v1224_v40 }
 0x58e   :  { %968 = vperm.xlu1 %1071, %v913_v61  }
 0x592   :  { %1072 = vset.pattern.permute.xlu1 %v1108_v4  ;;  %v923_v4 = vrot.slane %v914_v21, %v1166_v9 }
 0x593   :  { %978 = vperm.xlu1 %1072, %v913_v61  }
 0x5fe   :  { %v918_v6 = vpop.permute.xlu1 %917  ;;  %v927_v1 = vpop.permute.xlu0 %926 }
 0x5ff   :  { %v933_v24 = vmul.f32 %v932_v0, %v927_v1  ;;  %v924_v25 = vmul.f32 %v923_v4, %v918_v6 }
 0x601   :  { %v934_v36 = vadd.f32 %v933_v24, %v924_v25 }
 0x603   :  { %v937_v62 = vpop.permute.xlu1 %936  ;;  %v960_v12 = vpop.permute.xlu0 %959 }
 0x604   :  { %v966_v37 = vmul.f32 %v965_v58, %v960_v12  ;;  %v943_v40 = vmul.f32 %v942_v53, %v937_v62 }
 0x606   :  { %v944_v27 = vadd.f32 %v943_v40, %v934_v36 }
 0x608   :  { %v947_v10 = vpop.permute.xlu1 %946  ;;  %v989_v13 = vpop.permute.xlu0 %988 }
 0x609   :  { %v995_v9 = vmul.f32 %v994_v23, %v989_v13  ;;  %v953_v31 = vmul.f32 %v952_v5, %v947_v10 }
 0x60b   :  { %v954_v51 = vadd.f32 %v953_v31, %v944_v27 }
 0x60d   :  { %v969_v20 = vpop.permute.xlu1 %968 }
 0x60e   :  { %v975_v7 = vmul.f32 %v974_v17, %v969_v20 }
 0x610   :  { %v976_v26 = vadd.f32 %v975_v7, %v966_v37 }
 0x612   :  { %v979_v16 = vpop.permute.xlu1 %978 }
 0x613   :  { %v985_v32 = vmul.f32 %v984_v22, %v979_v16 }
 0x615   :  { %v986_v29 = vadd.f32 %v985_v32, %v976_v26 }
 0x617   :  { %v996_v42 = vadd.f32 %v995_v9, %v986_v29 }
 0x619   :  { %v998_v30 = vrot.slane %v996_v42, 6 }
 0x61b   :  { %v1000_v55 = vsel %vm906_vm2, %v954_v51, %v998_v30 }
 0x61c   :  { %1002 = vst.msk [vmem:[%s1474_s6] sm:$0xff] %vm1001_vm6, %v1000_v55 }

</bundles_post_ra>
